<compile_context>
chip_gen: v6e
topology: v6e:2x2x1
jax: 0.10.0
libtpu: 0.0.40
codegen_flags: <defaults>
</compile_context>

<pallas_src>
import jax
import jax.numpy as jnp
from jax.experimental import pallas as pl
from jax.experimental.pallas import tpu as pltpu


def _round_up(x, m):
    return ((x + m - 1) // m) * m


# ---------------------------------------------------------------------------
# Pallas kernel: fused concat-free MLP  (3 x Linear+ReLU, then Linear(->1))
# ---------------------------------------------------------------------------
def _mlp_kernel(xr_ref, xl_ref,
                w1r_ref, w1l_ref, b1_ref,
                w2_ref, b2_ref,
                w3_ref, b3_ref,
                w4_ref, b4_ref,
                out_ref):
    # Activations arrive f32; cast to bf16 in-register for the MXU.
    xr = xr_ref[...].astype(jnp.bfloat16)                     # (TB, 128)
    xl = xl_ref[...].astype(jnp.bfloat16)                     # (TB, 4)

    # Layer 1: fused concat => two matmuls sharing one f32 accumulator.
    h = jnp.dot(xr, w1r_ref[...], preferred_element_type=jnp.float32)
    h = h + jnp.dot(xl, w1l_ref[...], preferred_element_type=jnp.float32)
    h = jnp.maximum(h + b1_ref[...], 0.0)                     # (TB, 256) f32

    # Layer 2.
    h = jnp.maximum(
        jnp.dot(h.astype(jnp.bfloat16), w2_ref[...],
                preferred_element_type=jnp.float32) + b2_ref[...], 0.0)  # (TB, 128)

    # Layer 3.
    h = jnp.maximum(
        jnp.dot(h.astype(jnp.bfloat16), w3_ref[...],
                preferred_element_type=jnp.float32) + b3_ref[...], 0.0)  # (TB, 64)

    # Final Linear(64 -> 1): VPU multiply + lane reduce (skip the N=1 MXU dot).
    out_ref[...] = (jnp.sum(h * w4_ref[...], axis=-1, keepdims=True)
                    + b4_ref[...])                            # (TB, 1) f32


# ---------------------------------------------------------------------------
# Wrapper: reshape + (optional) batch padding in JAX, MLP in Pallas
# ---------------------------------------------------------------------------
@jax.jit
def rule_value_mlp_forward(rule_tensor, live_states, params):
    batch = rule_tensor.shape[0]
    flat_rule = rule_tensor.reshape(batch, -1)                # (B, 128) — no concat
    rule_size = flat_rule.shape[1]
    live_size = live_states.shape[1]

    (w1r, w1l, b1), (w2, b2), (w3, b3), (w4, b4) = params

    # Batch tile: sublane/bf16-pack aligned, >=256 rows, capped so double-
    # buffered tiles + intermediates fit comfortably in scoped VMEM on v7x.
    TB = min(1024, _round_up(max(batch, 16), 256))
    B_pad = _round_up(batch, TB)
    if B_pad != batch:
        pad = B_pad - batch
        flat_rule = jnp.pad(flat_rule, ((0, pad), (0, 0)))
        live_states = jnp.pad(live_states, ((0, pad), (0, 0)))

    tile_map = lambda i: (i, 0)
    resident = lambda i: (0, 0)   # weights/biases: fetched once, stay in VMEM

    out = pl.pallas_call(
        _mlp_kernel,
        out_shape=jax.ShapeDtypeStruct((B_pad, 1), jnp.float32),
        grid=(B_pad // TB,),
        in_specs=[
            pl.BlockSpec((TB, rule_size), tile_map),
            pl.BlockSpec((TB, live_size), tile_map),
            pl.BlockSpec(w1r.shape, resident),
            pl.BlockSpec(w1l.shape, resident),
            pl.BlockSpec(b1.shape, resident),
            pl.BlockSpec(w2.shape, resident),
            pl.BlockSpec(b2.shape, resident),
            pl.BlockSpec(w3.shape, resident),
            pl.BlockSpec(b3.shape, resident),
            pl.BlockSpec(w4.shape, resident),
            pl.BlockSpec(b4.shape, resident),
        ],
        out_specs=pl.BlockSpec((TB, 1), tile_map),
        compiler_params=pltpu.CompilerParams(
            dimension_semantics=("parallel",),   # megacore batch sharding on v7x
        ),
    )(flat_rule, live_states, w1r, w1l, b1, w2, b2, w3, b3, w4, b4)

    return out[:batch]


# ---------------------------------------------------------------------------
# Parameter init (nn.Linear default: U(-k, k), k = 1/sqrt(fan_in)).
# Layer-1 weight is split at the concat boundary; matmul weights stored bf16
# as (in, out); biases f32; final layer kept as an f32 (1, 64) row + scalar.
# ---------------------------------------------------------------------------
def init_params(key, n_states, max_nbrs, hidden_layers=(256, 128, 64)):
    rule_size = n_states * n_states * max_nbrs
    input_size = rule_size + n_states
    sizes = [input_size] + list(hidden_layers) + [1]
    raw = []
    for i in range(len(sizes) - 1):
        fan_in, fan_out = sizes[i], sizes[i + 1]
        key, kw, kb = jax.random.split(key, 3)
        bound = 1.0 / (fan_in ** 0.5)
        w = jax.random.uniform(kw, (fan_in, fan_out), jnp.float32, -bound, bound)
        b = jax.random.uniform(kb, (1, fan_out), jnp.float32, -bound, bound)
        raw.append((w, b))
    (w1, b1), (w2, b2), (w3, b3), (w4, b4) = raw
    return (
        (w1[:rule_size].astype(jnp.bfloat16),
         w1[rule_size:].astype(jnp.bfloat16), b1),
        (w2.astype(jnp.bfloat16), b2),
        (w3.astype(jnp.bfloat16), b3),
        (w4.T, b4),                      # (1, 64) f32 row, (1, 1) f32 bias
    )


# ---------------------------------------------------------------------------
# Pure-JAX reference using the same (bf16-cast) parameters / math
# ---------------------------------------------------------------------------
def reference_forward(rule_tensor, live_states, params):
    batch = rule_tensor.shape[0]
    (w1r, w1l, b1), (w2, b2), (w3, b3), (w4, b4) = params
    xr = rule_tensor.reshape(batch, -1).astype(jnp.bfloat16)
    xl = live_states.astype(jnp.bfloat16)
    h = (jnp.dot(xr, w1r, preferred_element_type=jnp.float32)
         + jnp.dot(xl, w1l, preferred_element_type=jnp.float32))
    h = jnp.maximum(h + b1, 0.0)
    h = jnp.maximum(
        jnp.dot(h.astype(jnp.bfloat16), w2, preferred_element_type=jnp.float32) + b2, 0.0)
    h = jnp.maximum(
        jnp.dot(h.astype(jnp.bfloat16), w3, preferred_element_type=jnp.float32) + b3, 0.0)
    return jnp.sum(h * w4, axis=-1, keepdims=True) + b4


if __name__ == "__main__":
    # Module-consistent small shapes: n_states=4, max_nbrs=8 ->
    #   rule_size = 4*4*8 = 128, input_size = 132, hidden = [256, 128, 64].
    n_states = 4
    max_nbrs = 8
    batch = 2

    key = jax.random.PRNGKey(0)
    k_rule, k_live, k_params = jax.random.split(key, 3)

    rule_tensor = jax.random.uniform(
        k_rule, (batch, n_states, n_states, max_nbrs), jnp.float32)
    live_states = jax.random.uniform(k_live, (batch, n_states), jnp.float32)
    params = init_params(k_params, n_states, max_nbrs)

    value = rule_value_mlp_forward(rule_tensor, live_states, params)
    value = jax.block_until_ready(value)

    ref = reference_forward(rule_tensor, live_states, params)
    assert value.shape == (batch, 1)
    # bf16 matmuls (f32 accumulate) in both paths; tolerance loosened vs fp32.
    assert jnp.allclose(value, ref, atol=1e-2, rtol=1e-2), (value, ref)

    print("KERNEL_OK")
</pallas_src>

<mosaic_0001>
module attributes {stable_mosaic.version = 11 : i64} {
  func.func @_mlp_kernel(%arg0: i32, %arg1: memref<256x128xf32, #tpu.memory_space<vmem>>, %arg2: memref<256x4xf32, #tpu.memory_space<vmem>>, %arg3: memref<128x256xbf16, #tpu.memory_space<vmem>>, %arg4: memref<4x256xbf16, #tpu.memory_space<vmem>>, %arg5: memref<1x256xf32, #tpu.memory_space<vmem>>, %arg6: memref<256x128xbf16, #tpu.memory_space<vmem>>, %arg7: memref<1x128xf32, #tpu.memory_space<vmem>>, %arg8: memref<128x64xbf16, #tpu.memory_space<vmem>>, %arg9: memref<1x64xf32, #tpu.memory_space<vmem>>, %arg10: memref<1x64xf32, #tpu.memory_space<vmem>>, %arg11: memref<1x1xf32, #tpu.memory_space<vmem>>, %arg12: memref<256x1xf32, #tpu.memory_space<vmem>>) attributes {dimension_semantics = [#tpu.dimension_semantics<parallel>], iteration_bounds = array<i64: 1>, scalar_prefetch = 0 : i64, scratch_operands = 0 : i64, tpu.core_type = #tpu.core_type<tc>, window_params = [{transform_indices = @transform_0, window_bounds = array<i64: 256, 128>}, {transform_indices = @transform_1, window_bounds = array<i64: 256, 4>}, {pipeline_mode = #tpu.pipeline_mode<synchronous>, transform_indices = @transform_2, window_bounds = array<i64: 128, 256>}, {pipeline_mode = #tpu.pipeline_mode<synchronous>, transform_indices = @transform_3, window_bounds = array<i64: 4, 256>}, {pipeline_mode = #tpu.pipeline_mode<synchronous>, transform_indices = @transform_4, window_bounds = array<i64: 1, 256>}, {pipeline_mode = #tpu.pipeline_mode<synchronous>, transform_indices = @transform_5, window_bounds = array<i64: 256, 128>}, {pipeline_mode = #tpu.pipeline_mode<synchronous>, transform_indices = @transform_6, window_bounds = array<i64: 1, 128>}, {pipeline_mode = #tpu.pipeline_mode<synchronous>, transform_indices = @transform_7, window_bounds = array<i64: 128, 64>}, {pipeline_mode = #tpu.pipeline_mode<synchronous>, transform_indices = @transform_8, window_bounds = array<i64: 1, 64>}, {pipeline_mode = #tpu.pipeline_mode<synchronous>, transform_indices = @transform_9, window_bounds = array<i64: 1, 64>}, {pipeline_mode = #tpu.pipeline_mode<synchronous>, transform_indices = @transform_10, window_bounds = array<i64: 1, 1>}, {transform_indices = @transform_11, window_bounds = array<i64: 256, 1>}]} {
    %c0 = arith.constant 0 : index
    %c0_0 = arith.constant 0 : index
    %0 = vector.load %arg1[%c0, %c0_0] : memref<256x128xf32, #tpu.memory_space<vmem>>, vector<256x128xf32>
    %1 = arith.truncf %0 : vector<256x128xf32> to vector<256x128xbf16>
    %c0_1 = arith.constant 0 : index
    %c0_2 = arith.constant 0 : index
    %2 = vector.load %arg2[%c0_1, %c0_2] : memref<256x4xf32, #tpu.memory_space<vmem>>, vector<256x4xf32>
    %3 = arith.truncf %2 : vector<256x4xf32> to vector<256x4xbf16>
    %c0_3 = arith.constant 0 : index
    %c0_4 = arith.constant 0 : index
    %4 = vector.load %arg3[%c0_3, %c0_4] : memref<128x256xbf16, #tpu.memory_space<vmem>>, vector<128x256xbf16>
    %cst = arith.constant dense<0.000000e+00> : vector<256x256xf32>
    %5 = tpu.matmul %1, %4, %cst {dimension_numbers = #tpu.dot_dimension_numbers<[1], [0], [0], [1], [0, 0, 1, 1], [], []>} : vector<256x128xbf16>, vector<128x256xbf16>, vector<256x256xf32> -> vector<256x256xf32>
    %c0_5 = arith.constant 0 : index
    %c0_6 = arith.constant 0 : index
    %6 = vector.load %arg4[%c0_5, %c0_6] : memref<4x256xbf16, #tpu.memory_space<vmem>>, vector<4x256xbf16>
    %cst_7 = arith.constant dense<0.000000e+00> : vector<256x256xf32>
    %7 = tpu.matmul %3, %6, %cst_7 {dimension_numbers = #tpu.dot_dimension_numbers<[1], [0], [0], [1], [0, 0, 1, 1], [], []>} : vector<256x4xbf16>, vector<4x256xbf16>, vector<256x256xf32> -> vector<256x256xf32>
    %8 = arith.addf %5, %7 : vector<256x256xf32>
    %c0_8 = arith.constant 0 : index
    %c0_9 = arith.constant 0 : index
    %9 = vector.load %arg5[%c0_8, %c0_9] : memref<1x256xf32, #tpu.memory_space<vmem>>, vector<1x256xf32>
    %10 = vector.broadcast %9 : vector<1x256xf32> to vector<256x256xf32>
    %11 = arith.addf %8, %10 : vector<256x256xf32>
    %cst_10 = arith.constant 0.000000e+00 : f32
    %12 = vector.broadcast %cst_10 : f32 to vector<256x256xf32>
    %13 = arith.maximumf %11, %12 : vector<256x256xf32>
    %14 = arith.truncf %13 : vector<256x256xf32> to vector<256x256xbf16>
    %c0_11 = arith.constant 0 : index
    %c0_12 = arith.constant 0 : index
    %15 = vector.load %arg6[%c0_11, %c0_12] : memref<256x128xbf16, #tpu.memory_space<vmem>>, vector<256x128xbf16>
    %cst_13 = arith.constant dense<0.000000e+00> : vector<256x128xf32>
    %16 = tpu.matmul %14, %15, %cst_13 {dimension_numbers = #tpu.dot_dimension_numbers<[1], [0], [0], [1], [0, 0, 1, 1], [], []>} : vector<256x256xbf16>, vector<256x128xbf16>, vector<256x128xf32> -> vector<256x128xf32>
    %c0_14 = arith.constant 0 : index
    %c0_15 = arith.constant 0 : index
    %17 = vector.load %arg7[%c0_14, %c0_15] : memref<1x128xf32, #tpu.memory_space<vmem>>, vector<1x128xf32>
    %18 = vector.broadcast %17 : vector<1x128xf32> to vector<256x128xf32>
    %19 = arith.addf %16, %18 : vector<256x128xf32>
    %cst_16 = arith.constant 0.000000e+00 : f32
    %20 = vector.broadcast %cst_16 : f32 to vector<256x128xf32>
    %21 = arith.maximumf %19, %20 : vector<256x128xf32>
    %22 = arith.truncf %21 : vector<256x128xf32> to vector<256x128xbf16>
    %c0_17 = arith.constant 0 : index
    %c0_18 = arith.constant 0 : index
    %23 = vector.load %arg8[%c0_17, %c0_18] : memref<128x64xbf16, #tpu.memory_space<vmem>>, vector<128x64xbf16>
    %cst_19 = arith.constant dense<0.000000e+00> : vector<256x64xf32>
    %24 = tpu.matmul %22, %23, %cst_19 {dimension_numbers = #tpu.dot_dimension_numbers<[1], [0], [0], [1], [0, 0, 1, 1], [], []>} : vector<256x128xbf16>, vector<128x64xbf16>, vector<256x64xf32> -> vector<256x64xf32>
    %c0_20 = arith.constant 0 : index
    %c0_21 = arith.constant 0 : index
    %25 = vector.load %arg9[%c0_20, %c0_21] : memref<1x64xf32, #tpu.memory_space<vmem>>, vector<1x64xf32>
    %26 = vector.broadcast %25 : vector<1x64xf32> to vector<256x64xf32>
    %27 = arith.addf %24, %26 : vector<256x64xf32>
    %cst_22 = arith.constant 0.000000e+00 : f32
    %28 = vector.broadcast %cst_22 : f32 to vector<256x64xf32>
    %29 = arith.maximumf %27, %28 : vector<256x64xf32>
    %c0_23 = arith.constant 0 : index
    %c0_24 = arith.constant 0 : index
    %30 = vector.load %arg10[%c0_23, %c0_24] : memref<1x64xf32, #tpu.memory_space<vmem>>, vector<1x64xf32>
    %31 = vector.broadcast %30 : vector<1x64xf32> to vector<256x64xf32>
    %32 = arith.mulf %29, %31 : vector<256x64xf32>
    %cst_25 = arith.constant dense<0.000000e+00> : vector<256xf32>
    %33 = vector.multi_reduction <add>, %32, %cst_25 [1] : vector<256x64xf32> to vector<256xf32>
    %34 = vector.shape_cast %33 : vector<256xf32> to vector<256x1xf32>
    %c0_26 = arith.constant 0 : index
    %c0_27 = arith.constant 0 : index
    %35 = vector.load %arg11[%c0_26, %c0_27] : memref<1x1xf32, #tpu.memory_space<vmem>>, vector<1x1xf32>
    %36 = vector.broadcast %35 : vector<1x1xf32> to vector<256x1xf32>
    %37 = arith.addf %34, %36 : vector<256x1xf32>
    %c0_28 = arith.constant 0 : index
    %c0_29 = arith.constant 0 : index
    %38 = vector.load %arg12[%c0_28, %c0_29] : memref<256x1xf32, #tpu.memory_space<vmem>>, vector<256x1xf32>
    tpu.vector_store %arg12[%c0_28, %c0_29], %37 {strides = array<i32>} : memref<256x1xf32, #tpu.memory_space<vmem>>, vector<256x1xf32>,
    return
  }
  func.func @transform_0(%arg0: i32) -> (i32, i32) {
    %c0_i32 = arith.constant 0 : i32
    %c0_i32_0 = arith.constant 0 : i32
    return %arg0, %c0_i32 : i32, i32
  }
  func.func @transform_1(%arg0: i32) -> (i32, i32) {
    %c0_i32 = arith.constant 0 : i32
    %c0_i32_0 = arith.constant 0 : i32
    return %arg0, %c0_i32 : i32, i32
  }
  func.func @transform_2(%arg0: i32) -> (i32, i32) {
    %c0_i32 = arith.constant 0 : i32
    %c0_i32_0 = arith.constant 0 : i32
    %c0_i32_1 = arith.constant 0 : i32
    return %c0_i32, %c0_i32_0 : i32, i32
  }
  func.func @transform_3(%arg0: i32) -> (i32, i32) {
    %c0_i32 = arith.constant 0 : i32
    %c0_i32_0 = arith.constant 0 : i32
    %c0_i32_1 = arith.constant 0 : i32
    return %c0_i32, %c0_i32_0 : i32, i32
  }
  func.func @transform_4(%arg0: i32) -> (i32, i32) {
    %c0_i32 = arith.constant 0 : i32
    %c0_i32_0 = arith.constant 0 : i32
    %c0_i32_1 = arith.constant 0 : i32
    return %c0_i32, %c0_i32_0 : i32, i32
  }
  func.func @transform_5(%arg0: i32) -> (i32, i32) {
    %c0_i32 = arith.constant 0 : i32
    %c0_i32_0 = arith.constant 0 : i32
    %c0_i32_1 = arith.constant 0 : i32
    return %c0_i32, %c0_i32_0 : i32, i32
  }
  func.func @transform_6(%arg0: i32) -> (i32, i32) {
    %c0_i32 = arith.constant 0 : i32
    %c0_i32_0 = arith.constant 0 : i32
    %c0_i32_1 = arith.constant 0 : i32
    return %c0_i32, %c0_i32_0 : i32, i32
  }
  func.func @transform_7(%arg0: i32) -> (i32, i32) {
    %c0_i32 = arith.constant 0 : i32
    %c0_i32_0 = arith.constant 0 : i32
    %c0_i32_1 = arith.constant 0 : i32
    return %c0_i32, %c0_i32_0 : i32, i32
  }
  func.func @transform_8(%arg0: i32) -> (i32, i32) {
    %c0_i32 = arith.constant 0 : i32
    %c0_i32_0 = arith.constant 0 : i32
    %c0_i32_1 = arith.constant 0 : i32
    return %c0_i32, %c0_i32_0 : i32, i32
  }
  func.func @transform_9(%arg0: i32) -> (i32, i32) {
    %c0_i32 = arith.constant 0 : i32
    %c0_i32_0 = arith.constant 0 : i32
    %c0_i32_1 = arith.constant 0 : i32
    return %c0_i32, %c0_i32_0 : i32, i32
  }
  func.func @transform_10(%arg0: i32) -> (i32, i32) {
    %c0_i32 = arith.constant 0 : i32
    %c0_i32_0 = arith.constant 0 : i32
    %c0_i32_1 = arith.constant 0 : i32
    return %c0_i32, %c0_i32_0 : i32, i32
  }
  func.func @transform_11(%arg0: i32) -> (i32, i32) {
    %c0_i32 = arith.constant 0 : i32
    %c0_i32_0 = arith.constant 0 : i32
    return %arg0, %c0_i32 : i32, i32
  }
}

</mosaic_0001>

<bundles_post_ra>
// kernel: rule_value_mlp_forward.1
= control target key start
LH: loop header
LB: loop body
LE: loop exit
PB: predicated region body
PF: predicated region fallthrough
CT: control target
= control target key end

     0   :  { %vm212_vm0 = vcmask 1041408   ;;  %v1974_v1 = vmov 0   ;;  %vm163_vm1 = vcmask 31744   ;;  %vm1504_vm2 = vcmask 523264   ;;  %s2912_s3 = inlined_call_operand.vmem [shape: bf16[4,256], index: 3, kind: input, shape index: {}]   ;;  %s2913_s1 = inlined_call_operand.vmem [shape: f32[256,4], index: 1, kind: input, shape index: {}]   ;;  %s2914_s2 = inlined_call_operand.vmem [shape: bf16[128,256], index: 2, kind: input, shape index: {}]   ;;  %s2915_s0 = inlined_call_operand.vmem [shape: f32[256,128], index: 0, kind: input, shape index: {}]   ;;  %s2916_s5 = inlined_call_operand.vmem [shape: bf16[256,128], index: 5, kind: input, shape index: {}]   ;;  %s2917_s4 = inlined_call_operand.vmem [shape: f32[1,256], index: 4, kind: input, shape index: {}]   ;;  %s2918_s7 = inlined_call_operand.vmem [shape: bf16[128,64], index: 7, kind: input, shape index: {}]   ;;  %s2919_s6 = inlined_call_operand.vmem [shape: f32[1,128], index: 6, kind: input, shape index: {}]   ;;  %s2920_s8 = inlined_call_operand.vmem [shape: f32[1,64], index: 8, kind: input, shape index: {}]   ;;  %s2921_s9 = inlined_call_operand.vmem [shape: f32[1,64], index: 9, kind: input, shape index: {}]   ;;  %s2922_s10 = inlined_call_operand.<no memory space> [shape: f32[1,1], index: 10, kind: input, shape index: {}]   ;;  %s2923_s11 = inlined_call_operand.vmem [shape: f32[256,1], index: 11, kind: output, shape index: {}]  }
   0x1   :  { %v1677_v0 = vld.sshfl [vmem:[%s2912_s3] sm:$0x33 pattern:$0x76325410]  ;;  %371 = vmatprep.mubr.bf16.mxu1 %v1974_v1  ;;  %v114_v3 = vld [vmem:[%s2913_s1 + $0xc8] sm:$0xff]  ;;  %251 = vmatprep.mubr.bf16.mxu0 %v1974_v1  ;;  %v115_v11 = vld [vmem:[%s2913_s1 + $0xd0] sm:$0xff] }
   0x2   :  { %v113_v2 = vld [vmem:[%s2913_s1 + $0xc0] sm:$0xff]  ;;  %v162_v4 = vcombine.high %v1677_v0, %v1677_v0  ;;  %v214_v5 = vsel %vm212_vm0, %v1677_v0, 0  ;;  %v1928_v6 = vld [vmem:[%s2914_s2 + $0x74] ss:$8 sps:$4 sm:$0xff]   ;;  %v1926_v8 = vld [vmem:[%s2914_s2 + $0x70] ss:$8 sps:$4 sm:$0xff]  }
   0x3   :  { %v133_v7 = vpack.c.bf16 %v114_v3, %v113_v2  ;;  %v1931_v9 = vld [vmem:[%s2914_s2 + $0x64] ss:$8 sps:$4 sm:$0xff]   ;;  %v1929_v10 = vld [vmem:[%s2914_s2 + $0x60] ss:$8 sps:$4 sm:$0xff]   ;;  %v116_v12 = vld [vmem:[%s2913_s1 + $0xd8] sm:$0xff]  ;;  %vm1640_vm3 = vcmask 7168  }
   0x4   :  { %1923 = vmatprep.subr.msk.bf16.mxu1 %vm212_vm0, %v162_v4  ;;  %1678 = vmatprep.subr.msk.bf16.mxu0 %vm212_vm0, %v162_v4  ;;  %v1934_v13 = vld [vmem:[%s2914_s2 + $0x54] ss:$8 sps:$4 sm:$0xff]   ;;  %v134_v14 = vpack.c.bf16 %v116_v12, %v115_v11  ;;  %v1932_v15 = vld [vmem:[%s2914_s2 + $0x50] ss:$8 sps:$4 sm:$0xff]   ;;  %v89_v16 = vld [vmem:[%s2913_s1] sm:$0xff] }
   0x5   :  { %1924 = vmatpush1.bf16.msra.mxu1 %v214_v5  ;;  %234 = vmatpush1.bf16.msra.mxu0 %v214_v5  ;;  %v90_v17 = vld [vmem:[%s2913_s1 + $0x8] sm:$0xff]  ;;  %v117_v21 = vld [vmem:[%s2913_s1 + $0xe0] sm:$0xff]  ;;  %v91_v23 = vld [vmem:[%s2913_s1 + $0x10] sm:$0xff] }
   0x6   :  { %492 = vmatprep.subr.bf16.mxu1 %v1928_v6  ;;  %v1937_v18 = vld [vmem:[%s2914_s2 + $0x44] ss:$8 sps:$4 sm:$0xff]   ;;  %v121_v19 = vpack.c.bf16 %v90_v17, %v89_v16  ;;  %v1935_v20 = vld [vmem:[%s2914_s2 + $0x40] ss:$8 sps:$4 sm:$0xff]   ;;  %v92_v24 = vld [vmem:[%s2913_s1 + $0x18] sm:$0xff] }
   0x7   :  { %v118_v22 = vld [vmem:[%s2913_s1 + $0xe8] sm:$0xff]  ;;  %v1940_v25 = vld [vmem:[%s2914_s2 + $0x34] ss:$8 sps:$4 sm:$0xff]   ;;  %v122_v27 = vpack.c.bf16 %v92_v24, %v91_v23  ;;  %v1938_v28 = vld [vmem:[%s2914_s2 + $0x30] ss:$8 sps:$4 sm:$0xff]  }
   0x8   :  { %1691 = vmatmul.mubr.msk.bf16.vlgmr.msra.gmra.mxu1 %vm163_vm1, %v133_v7  ;;  %1679 = vmatmul.mubr.msk.bf16.vlgmr.msra.gmra.mxu0 %vm163_vm1, %v121_v19  ;;  %v135_v26 = vpack.c.bf16 %v118_v22, %v117_v21  ;;  %v1943_v29 = vld [vmem:[%s2914_s2 + $0x24] ss:$8 sps:$4 sm:$0xff]   ;;  %v1941_v30 = vld [vmem:[%s2914_s2 + $0x20] ss:$8 sps:$4 sm:$0xff]   ;;  %v119_v31 = vld [vmem:[%s2913_s1 + $0xf0] sm:$0xff] }
   0x9   :  { %493 = vmatpush1.bf16.msra.mxu1 %v1926_v8  ;;  %381 = vmatprep.mubr.bf16.mxu1 %v1974_v1  ;;  %v120_v32 = vld [vmem:[%s2913_s1 + $0xf8] sm:$0xff]  ;;  %v93_v33 = vld [vmem:[%s2913_s1 + $0x20] sm:$0xff]  ;;  %v94_v34 = vld [vmem:[%s2913_s1 + $0x28] sm:$0xff] }
   0xa   :  { %494 = vmatprep.subr.bf16.mxu1 %v1931_v9  ;;  %261 = vmatprep.mubr.bf16.mxu0 %v1974_v1  ;;  %v1946_v35 = vld [vmem:[%s2914_s2 + $0x14] ss:$8 sps:$4 sm:$0xff]   ;;  %v136_v36 = vpack.c.bf16 %v120_v32, %v119_v31  ;;  %v123_v37 = vpack.c.bf16 %v94_v34, %v93_v33  ;;  %v1944_v38 = vld [vmem:[%s2914_s2 + $0x10] ss:$8 sps:$4 sm:$0xff]   ;;  %v1949_v39 = vld [vmem:[%s2914_s2 + $0x4] ss:$8 sps:$4 sm:$0xff]  }
   0xb   :  { %v1947_v40 = vld [vmem:[%s2914_s2] ss:$8 sps:$4 sm:$0xff]   ;;  %v95_v43 = vld [vmem:[%s2913_s1 + $0x30] sm:$0xff]  ;;  %v96_v44 = vld [vmem:[%s2913_s1 + $0x38] sm:$0xff] }
   0xc   :  { %v41_v41 = vld [vmem:[%s2915_s0] sm:$0xff]  ;;  %v42_v42 = vld [vmem:[%s2915_s0 + $0x8] sm:$0xff]  ;;  %v1950_v45 = vld [vmem:[%s2916_s5 + $0x78] sm:$0xff]   ;;  %v124_v48 = vpack.c.bf16 %v96_v44, %v95_v43 }
   0xd   :  { %495 = vmatpush1.bf16.msra.mxu1 %v1929_v10  ;;  %v1951_v46 = vld [vmem:[%s2916_s5 + $0x38] sm:$0xff]   ;;  %1739 = vmatprep.subr.bf16.mxu0 %v1950_v45  ;;  %v73_v47 = vpack.c.bf16 %v42_v42, %v41_v41  ;;  %v1952_v49 = vld [vmem:[%s2916_s5 + $0x70] sm:$0xff]   ;;  %v97_v53 = vld [vmem:[%s2913_s1 + $0x40] sm:$0xff] }
   0xe   :  { %496 = vmatprep.subr.bf16.mxu1 %v1934_v13  ;;  %1740 = vmatpush3.bf16.msra.mxu0 %v1951_v46  ;;  %v1953_v50 = vld [vmem:[%s2916_s5 + $0x30] sm:$0xff]   ;;  %v44_v52 = vld [vmem:[%s2915_s0 + $0x18] sm:$0xff]  ;;  %v98_v54 = vld [vmem:[%s2913_s1 + $0x48] sm:$0xff] }
   0xf   :  { %1741 = vmatprep.subr.bf16.mxu0 %v1952_v49  ;;  %v43_v51 = vld [vmem:[%s2915_s0 + $0x10] sm:$0xff]  ;;  %v1954_v55 = vld [vmem:[%s2916_s5 + $0x68] sm:$0xff]   ;;  %v1956_v57 = vld [vmem:[%s2916_s5 + $0x60] sm:$0xff]   ;;  %v125_v59 = vpack.c.bf16 %v98_v54, %v97_v53 }
  0x10   :  { %1692 = vmatmul.mubr.msk.bf16.gmra.mxu1 %vm163_vm1, %v134_v14  ;;  %1680 = vmatmul.mubr.msk.bf16.gmra.mxu0 %vm163_vm1, %v122_v27  ;;  %v1955_v56 = vld [vmem:[%s2916_s5 + $0x28] sm:$0xff]   ;;  %v74_v58 = vpack.c.bf16 %v44_v52, %v43_v51  ;;  %v1957_v60 = vld [vmem:[%s2916_s5 + $0x20] sm:$0xff]   ;;  %v99_v63 = vld [vmem:[%s2913_s1 + $0x50] sm:$0xff] }
  0x11   :  { %497 = vmatpush1.bf16.msra.mxu1 %v1932_v15  ;;  %391 = vmatprep.mubr.bf16.mxu1 %v1974_v1  ;;  %v45_v61 = vld [vmem:[%s2915_s0 + $0x20] sm:$0xff]  ;;  %v46_v62 = vld [vmem:[%s2915_s0 + $0x28] sm:$0xff]  ;;  %v100_v0 = vld [vmem:[%s2913_s1 + $0x58] sm:$0xff] }
  0x12   :  { %498 = vmatprep.subr.bf16.mxu1 %v1937_v18  ;;  %271 = vmatprep.mubr.bf16.mxu0 %v1974_v1  ;;  %v75_v2 = vpack.c.bf16 %v46_v62, %v45_v61  ;;  %v126_v3 = vpack.c.bf16 %v100_v0, %v99_v63  ;;  %v47_v4 = vld [vmem:[%s2915_s0 + $0x30] sm:$0xff]  ;;  %v48_v5 = vld [vmem:[%s2915_s0 + $0x38] sm:$0xff]  ;;  %v101_v6 = vld [vmem:[%s2913_s1 + $0x60] sm:$0xff] }
  0x13   :  { %1742 = vmatpush3.bf16.msra.mxu0 %v1953_v50  ;;  %v102_v7 = vld [vmem:[%s2913_s1 + $0x68] sm:$0xff]  ;;  %v76_v8 = vpack.c.bf16 %v48_v5, %v47_v4  ;;  %v49_v10 = vld [vmem:[%s2915_s0 + $0x40] sm:$0xff]  ;;  %v103_v12 = vld [vmem:[%s2913_s1 + $0x70] sm:$0xff] }
  0x14   :  { %1743 = vmatprep.subr.bf16.mxu0 %v1954_v55  ;;  %v127_v9 = vpack.c.bf16 %v102_v7, %v101_v6  ;;  %v50_v11 = vld [vmem:[%s2915_s0 + $0x48] sm:$0xff]  ;;  %v104_v13 = vld [vmem:[%s2913_s1 + $0x78] sm:$0xff]  ;;  %v51_v16 = vld [vmem:[%s2915_s0 + $0x50] sm:$0xff] }
  0x15   :  { %499 = vmatpush1.bf16.msra.mxu1 %v1935_v20  ;;  %v77_v14 = vpack.c.bf16 %v50_v11, %v49_v10  ;;  %v128_v15 = vpack.c.bf16 %v104_v13, %v103_v12  ;;  %v1958_v17 = vld [vmem:[%s2916_s5 + $0x58] sm:$0xff]   ;;  %v105_v20 = vld [vmem:[%s2913_s1 + $0x80] sm:$0xff]  ;;  %v106_v21 = vld [vmem:[%s2913_s1 + $0x88] sm:$0xff] }
  0x16   :  { %500 = vmatprep.subr.bf16.mxu1 %v1940_v25  ;;  %v1959_v18 = vld [vmem:[%s2916_s5 + $0x18] sm:$0xff]   ;;  %v129_v23 = vpack.c.bf16 %v106_v21, %v105_v20  ;;  %v53_v24 = vld [vmem:[%s2915_s0 + $0x60] sm:$0xff]  ;;  %v54_v25 = vld [vmem:[%s2915_s0 + $0x68] sm:$0xff] }
  0x17   :  { %1744 = vmatpush3.bf16.msra.mxu0 %v1955_v56  ;;  %v52_v19 = vld [vmem:[%s2915_s0 + $0x58] sm:$0xff]  ;;  %v1961_v31 = vld [vmem:[%s2916_s5 + $0x10] sm:$0xff]   ;;  %v109_v34 = vld [vmem:[%s2913_s1 + $0xa0] sm:$0xff] }
  0x18   :  { %1693 = vmatmul.mubr.msk.bf16.gmra.mxu1 %vm163_vm1, %v135_v26  ;;  %1681 = vmatmul.mubr.msk.bf16.gmra.mxu0 %vm163_vm1, %v123_v37  ;;  %v78_v22 = vpack.c.bf16 %v52_v19, %v51_v16  ;;  %v107_v26 = vld [vmem:[%s2913_s1 + $0x90] sm:$0xff]  ;;  %v108_v27 = vld [vmem:[%s2913_s1 + $0x98] sm:$0xff]  ;;  %v58_v41 = vld [vmem:[%s2915_s0 + $0x88] sm:$0xff] }
  0x19   :  { %501 = vmatpush1.bf16.msra.mxu1 %v1938_v28  ;;  %401 = vmatprep.mubr.bf16.mxu1 %v1974_v1  ;;  %v79_v28 = vpack.c.bf16 %v54_v25, %v53_v24  ;;  %v55_v32 = vld [vmem:[%s2915_s0 + $0x70] sm:$0xff]  ;;  %v56_v33 = vld [vmem:[%s2915_s0 + $0x78] sm:$0xff]  ;;  %v61_v49 = vld [vmem:[%s2915_s0 + $0xa0] sm:$0xff] }
  0x1a   :  { %502 = vmatprep.subr.bf16.mxu1 %v1943_v29  ;;  %281 = vmatprep.mubr.bf16.mxu0 %v1974_v1  ;;  %v130_v29 = vpack.c.bf16 %v108_v27, %v107_v26  ;;  %v111_v42 = vld [vmem:[%s2913_s1 + $0xb0] sm:$0xff]  ;;  %v112_v43 = vld [vmem:[%s2913_s1 + $0xb8] sm:$0xff]  ;;  %v62_v50 = vld [vmem:[%s2915_s0 + $0xa8] sm:$0xff]  ;;  %v687_v26 = vlaneseq }
  0x1b   :  { %1745 = vmatprep.subr.bf16.mxu0 %v1956_v57  ;;  %v132_v45 = vpack.c.bf16 %v112_v43, %v111_v42  ;;  %v59_v46 = vld [vmem:[%s2915_s0 + $0x90] sm:$0xff]  ;;  %v1964_v51 = vld [vmem:[%s2916_s5 + $0x40] sm:$0xff]   ;;  %v83_v53 = vpack.c.bf16 %v62_v50, %v61_v49  ;;  %v64_v55 = vld [vmem:[%s2915_s0 + $0xb8] sm:$0xff] }
  0x1c   :  { %1746 = vmatpush3.bf16.msra.mxu0 %v1957_v60  ;;  %v1965_v52 = vld [vmem:[%s2916_s5] sm:$0xff]   ;;  %v63_v54 = vld [vmem:[%s2915_s0 + $0xb0] sm:$0xff]  ;;  %v68_v61 = vld [vmem:[%s2915_s0 + $0xd8] sm:$0xff] }
  0x1d   :  { %503 = vmatpush1.bf16.msra.mxu1 %v1941_v30  ;;  %1747 = vmatprep.subr.bf16.mxu0 %v1958_v17  ;;  %v1960_v30 = vld [vmem:[%s2916_s5 + $0x50] sm:$0xff]   ;;  %v84_v56 = vpack.c.bf16 %v64_v55, %v63_v54  ;;  %v65_v57 = vld [vmem:[%s2915_s0 + $0xc0] sm:$0xff]  ;;  %v70_v0 = vld [vmem:[%s2915_s0 + $0xe8] sm:$0xff] }
  0x1e   :  { %504 = vmatprep.subr.bf16.mxu1 %v1946_v35  ;;  %v110_v35 = vld [vmem:[%s2913_s1 + $0xa8] sm:$0xff]  ;;  %v67_v60 = vld [vmem:[%s2915_s0 + $0xd0] sm:$0xff]  ;;  %v69_v63 = vld [vmem:[%s2915_s0 + $0xe0] sm:$0xff] }
  0x1f   :  { %v131_v37 = vpack.c.bf16 %v110_v35, %v109_v34  ;;  %v86_v62 = vpack.c.bf16 %v68_v61, %v67_v60  ;;  %v72_v4 = vld [vmem:[%s2915_s0 + $0xf8] sm:$0xff] }
  0x20   :  { %1694 = vmatmul.mubr.msk.bf16.gmra.mxu1 %vm163_vm1, %v136_v36  ;;  %1682 = vmatmul.mubr.msk.bf16.gmra.mxu0 %vm163_vm1, %v124_v48  ;;  %v80_v36 = vpack.c.bf16 %v56_v33, %v55_v32 }
  0x21   :  { %505 = vmatpush1.bf16.msra.mxu1 %v1944_v38  ;;  %524 = vmatprep.mubr.bf16.mxu1 %v1974_v1  ;;  %v57_v38 = vld [vmem:[%s2915_s0 + $0x80] sm:$0xff] }
  0x22   :  { %506 = vmatprep.subr.bf16.mxu1 %v1949_v39  ;;  %291 = vmatprep.mubr.bf16.mxu0 %v1974_v1  ;;  %v1962_v39 = vld [vmem:[%s2916_s5 + $0x48] sm:$0xff]   ;;  %v81_v44 = vpack.c.bf16 %v58_v41, %v57_v38 }
  0x23   :  { %1748 = vmatpush3.bf16.msra.mxu0 %v1959_v18 }
  0x24   :  { %1749 = vmatprep.subr.bf16.mxu0 %v1960_v30 }
  0x25   :  { %507 = vmatpush1.bf16.msra.mxu1 %v1947_v40  ;;  %v1963_v40 = vld [vmem:[%s2916_s5 + $0x8] sm:$0xff]  }
  0x27   :  { %1750 = vmatpush3.bf16.msra.mxu0 %v1961_v31  ;;  %v688_v31 = vshrl.u32 %v687_v26, 7 }
  0x28   :  { %525 = vmatmul.mubr.bf16.vlgmr.msra.gmra.mxu1 %v73_v47  ;;  %1683 = vmatmul.mubr.msk.bf16.gmra.mxu0 %vm163_vm1, %v125_v59  ;;  %v60_v47 = vld [vmem:[%s2915_s0 + $0x98] sm:$0xff] }
  0x29   :  { %534 = vmatprep.mubr.bf16.mxu1 %v1974_v1  ;;  %301 = vmatprep.mubr.bf16.mxu0 %v1974_v1  ;;  %v82_v48 = vpack.c.bf16 %v60_v47, %v59_v46  ;;  %v693_v35 = vsub.s32 1, %v688_v31 }
  0x2a   :  { %1751 = vmatprep.subr.bf16.mxu0 %v1962_v39  ;;  %v685_v39 = vld [vmem:[%s2917_s4] sm:$0x3] }
  0x2b   :  { %1752 = vmatpush3.bf16.msra.mxu0 %v1963_v40  ;;  %v2421_v43 = vrot.slane %v685_v39, %v693_v35 }
  0x2c   :  { %1753 = vmatprep.subr.bf16.mxu0 %v1964_v51 }
  0x2f   :  { %1754 = vmatpush3.bf16.msra.mxu0 %v1965_v52 }
  0x30   :  { %535 = vmatmul.mubr.bf16.gmra.mxu1 %v74_v58  ;;  %1684 = vmatmul.mubr.msk.bf16.gmra.mxu0 %vm163_vm1, %v126_v3  ;;  %v66_v58 = vld [vmem:[%s2915_s0 + $0xc8] sm:$0xff]  ;;  %v71_v3 = vld [vmem:[%s2915_s0 + $0xf0] sm:$0xff] }
  0x31   :  { %544 = vmatprep.mubr.bf16.mxu1 %v1974_v1  ;;  %311 = vmatprep.mubr.bf16.mxu0 %v1974_v1  ;;  %v85_v59 = vpack.c.bf16 %v66_v58, %v65_v57  ;;  %v88_v5 = vpack.c.bf16 %v72_v4, %v71_v3  ;;  %v1966_v58 = vld [vmem:[%s2918_s7 + $0x38] sm:$0xff]  }
  0x32   :  { %1875 = vmatprep.subr.bf16.mxu1 %v1966_v58 }
  0x33   :  { %1876 = vmatpush3.bf16.msra.mxu1 %v1966_v58 }
  0x38   :  { %545 = vmatmul.mubr.bf16.gmra.mxu1 %v75_v2  ;;  %1685 = vmatmul.mubr.msk.bf16.gmra.mxu0 %vm163_vm1, %v127_v9  ;;  %v87_v2 = vpack.c.bf16 %v70_v0, %v69_v63 }
  0x39   :  { %554 = vmatprep.mubr.bf16.mxu1 %v1974_v1  ;;  %321 = vmatprep.mubr.bf16.mxu0 %v1974_v1 }
  0x40   :  { %555 = vmatmul.mubr.bf16.gmra.mxu1 %v76_v8  ;;  %1686 = vmatmul.mubr.msk.bf16.gmra.mxu0 %vm163_vm1, %v128_v15 }
  0x41   :  { %564 = vmatprep.mubr.bf16.mxu1 %v1974_v1  ;;  %331 = vmatprep.mubr.bf16.mxu0 %v1974_v1 }
  0x48   :  { %565 = vmatmul.mubr.bf16.gmra.mxu1 %v77_v14  ;;  %1687 = vmatmul.mubr.msk.bf16.gmra.mxu0 %vm163_vm1, %v129_v23 }
  0x49   :  { %574 = vmatprep.mubr.bf16.mxu1 %v1974_v1  ;;  %341 = vmatprep.mubr.bf16.mxu0 %v1974_v1 }
  0x50   :  { %575 = vmatmul.mubr.bf16.gmra.mxu1 %v78_v22  ;;  %1688 = vmatmul.mubr.msk.bf16.gmra.mxu0 %vm163_vm1, %v130_v29 }
  0x51   :  { %584 = vmatprep.mubr.bf16.mxu1 %v1974_v1  ;;  %351 = vmatprep.mubr.bf16.mxu0 %v1974_v1 }
  0x58   :  { %585 = vmatmul.mubr.bf16.gmra.mxu1 %v79_v28  ;;  %1689 = vmatmul.mubr.msk.bf16.gmra.mxu0 %vm163_vm1, %v131_v37  ;;  %v689_v37 = vsub.s32 0, %v688_v31 }
  0x59   :  { %594 = vmatprep.mubr.bf16.mxu1 %v1974_v1  ;;  %361 = vmatprep.mubr.bf16.mxu0 %v1974_v1 }
  0x60   :  { %595 = vmatmul.mubr.bf16.gmra.mxu1 %v80_v36  ;;  %1690 = vmatmul.mubr.msk.bf16.gmra.mxu0 %vm163_vm1, %v132_v45  ;;  %v2423_v45 = vrot.slane %v685_v39, %v689_v37 }
  0x61   :  { %604 = vmatprep.mubr.bf16.mxu1 %v1974_v1 }
  0x68   :  { %605 = vmatmul.mubr.bf16.gmra.mxu1 %v81_v44 }
  0x69   :  { %614 = vmatprep.mubr.bf16.mxu1 %v1974_v1 }
  0x70   :  { %615 = vmatmul.mubr.bf16.gmra.mxu1 %v82_v48 }
  0x71   :  { %624 = vmatprep.mubr.bf16.mxu1 %v1974_v1 }
  0x78   :  { %625 = vmatmul.mubr.bf16.gmra.mxu1 %v83_v53 }
  0x79   :  { %634 = vmatprep.mubr.bf16.mxu1 %v1974_v1 }
  0x80   :  { %635 = vmatmul.mubr.bf16.gmra.mxu1 %v84_v56 }
  0x81   :  { %644 = vmatprep.mubr.bf16.mxu1 %v1974_v1 }
  0x88   :  { %645 = vmatmul.mubr.bf16.gmra.mxu1 %v85_v59 }
  0x89   :  { %654 = vmatprep.mubr.bf16.mxu1 %v1974_v1 }
  0x90   :  { %655 = vmatmul.mubr.bf16.gmra.mxu1 %v86_v62  ;;  %v1967_v62 = vld [vmem:[%s2918_s7 + $0x30] sm:$0xff]  }
  0x91   :  { %664 = vmatprep.mubr.bf16.mxu1 %v1974_v1  ;;  %1877 = vmatprep.subr.bf16.mxu1 %v1967_v62 }
  0x92   :  { %1878 = vmatpush3.bf16.msra.mxu1 %v1967_v62 }
  0x98   :  { %665 = vmatmul.mubr.bf16.gmra.mxu1 %v87_v2 }
  0x99   :  { %674 = vmatprep.mubr.bf16.mxu1 %v1974_v1 }
  0xa0   :  { %675 = vmatmul.mubr.bf16.gmra.mxu1 %v88_v5 }
  0xc8   :  { %v2374_v6 = vpop.f32.mrf.mxu1  ;;  %v253_v1 = vpop.f32.mrf.mxu0 }
  0xca   :  { %v2376_v7 = vpop.f32.mrf.mxu1  ;;  %v255_v12 = vpop.f32.mrf.mxu0 }
  0xcc   :  { %v2378_v8 = vpop.f32.mrf.mxu1  ;;  %v257_v14 = vpop.f32.mrf.mxu0 }
  0xce   :  { %v2380_v9 = vpop.f32.mrf.mxu1  ;;  %v259_v16 = vpop.f32.mrf.mxu0 }
  0xd0   :  { %v2382_v10 = vpop.f32.mrf.mxu1  ;;  %v263_v18 = vpop.f32.mrf.mxu0 }
  0xd2   :  { %v2384_v11 = vpop.f32.mrf.mxu1  ;;  %v265_v20 = vpop.f32.mrf.mxu0 }
  0xd4   :  { %v2386_v13 = vpop.f32.mrf.mxu1  ;;  %v267_v22 = vpop.f32.mrf.mxu0 }
  0xd6   :  { %v2388_v15 = vpop.f32.mrf.mxu1  ;;  %v269_v24 = vpop.f32.mrf.mxu0 }
  0xd8   :  { %v2390_v17 = vpop.f32.mrf.mxu1  ;;  %v2400_v27 = vpop.f32.mrf.mxu0 }
  0xda   :  { %v2392_v19 = vpop.f32.mrf.mxu1  ;;  %v2404_v29 = vpop.f32.mrf.mxu0 }
  0xdc   :  { %v2394_v21 = vpop.f32.mrf.mxu1  ;;  %v2408_v32 = vpop.f32.mrf.mxu0 }
  0xde   :  { %v2396_v23 = vpop.f32.mrf.mxu1  ;;  %v2412_v34 = vpop.f32.mrf.mxu0 }
  0xe0   :  { %v2398_v25 = vpop.f32.mrf.mxu1  ;;  %v2414_v38 = vpop.f32.mrf.mxu0 }
  0xe2   :  { %v2402_v28 = vpop.f32.mrf.mxu1  ;;  %v2419_v41 = vpop.f32.mrf.mxu0 }
  0xe4   :  { %v2406_v30 = vpop.f32.mrf.mxu1  ;;  %v2425_v47 = vpop.f32.mrf.mxu0 }
  0xe6   :  { %v2410_v33 = vpop.f32.mrf.mxu1  ;;  %v2427_v50 = vpop.f32.mrf.mxu0 }
  0xe8   :  { %v526_v36 = vpop.f32.mrf.mxu1  ;;  %v2432_v56 = vpop.f32.mrf.mxu0 }
  0xe9   :  { %v527_v44 = vadd.f32 %v526_v36, %v253_v1 }
  0xea   :  { %v528_v40 = vpop.f32.mrf.mxu1  ;;  %v2438_v61 = vpop.f32.mrf.mxu0 }
  0xeb   :  { %v529_v42 = vadd.f32 %v528_v40, %v255_v12  ;;  %v697_v54 = vadd.f32 %v2423_v45, %v527_v44 }
  0xec   :  { %v530_v46 = vpop.f32.mrf.mxu1  ;;  %v2443_v1 = vpop.f32.mrf.mxu0 }
  0xed   :  { %v531_v48 = vadd.f32 %v530_v46, %v257_v14  ;;  %v698_v51 = vadd.f32 %v2421_v43, %v529_v42  ;;  %v761_v3 = vmax.f32 %v697_v54, 0.0  ;;  %v1969_v42 = vld [vmem:[%s2918_s7 + $0x20] sm:$0xff]  }
  0xee   :  { %v532_v49 = vpop.f32.mrf.mxu1  ;;  %v2448_v35 = vpop.f32.mrf.mxu0 }
  0xef   :  { %v699_v52 = vadd.f32 %v2423_v45, %v531_v48  ;;  %v533_v53 = vadd.f32 %v532_v49, %v259_v16  ;;  %v762_v63 = vmax.f32 %v698_v51, 0.0  ;;  %v1968_v16 = vld [vmem:[%s2918_s7 + $0x28] sm:$0xff]  }
  0xf0   :  { %v536_v55 = vpop.f32.mrf.mxu1  ;;  %1879 = vmatprep.subr.bf16.mxu1 %v1968_v16 }
  0xf1   :  { %v700_v57 = vadd.f32 %v2421_v43, %v533_v53  ;;  %v763_v59 = vmax.f32 %v699_v52, 0.0  ;;  %v537_v4 = vadd.f32 %v536_v55, %v263_v18  ;;  %1880 = vmatpush3.bf16.msra.mxu1 %v1968_v16 }
  0xf2   :  { %v538_v60 = vpop.f32.mrf.mxu1  ;;  %1881 = vmatprep.subr.bf16.mxu1 %v1969_v42 }
  0xf3   :  { %v764_v0 = vmax.f32 %v700_v57, 0.0  ;;  %v539_v2 = vadd.f32 %v538_v60, %v265_v20  ;;  %v825_v26 = vpack.c.bf16 %v763_v59, %v761_v3  ;;  %v701_v37 = vadd.f32 %v2423_v45, %v537_v4 }
  0xf4   :  { %v540_v5 = vpop.f32.mrf.mxu1 }
  0xf5   :  { %v541_v12 = vadd.f32 %v540_v5, %v267_v22  ;;  %v826_v14 = vpack.c.bf16 %v764_v0, %v762_v63  ;;  %v702_v20 = vadd.f32 %v2421_v43, %v539_v2  ;;  %v2453_v22 = vpop.f32.mrf.mxu0  ;;  %v765_v52 = vmax.f32 %v701_v37, 0.0  ;;  %1882 = vmatpush3.bf16.msra.mxu1 %v1969_v42 }
  0xf6   :  { %v542_v31 = vpop.f32.mrf.mxu1 }
  0xf7   :  { %v703_v36 = vadd.f32 %v2423_v45, %v541_v12  ;;  %v543_v18 = vadd.f32 %v542_v31, %v269_v24  ;;  %1024 = vmatprep.mubr.bf16.mxu0 %v826_v14  ;;  %v2459_v48 = vpop.f32.mrf.mxu0  ;;  %v766_v24 = vmax.f32 %v702_v20, 0.0 }
  0xf8   :  { %v546_v39 = vpop.f32.mrf.mxu1  ;;  %1025 = vmatmul.mubr.bf16.vlgmr.msra.gmra.mxu0 %v825_v26 }
  0xf9   :  { %v704_v40 = vadd.f32 %v2421_v43, %v543_v18  ;;  %v767_v44 = vmax.f32 %v703_v36, 0.0  ;;  %v547_v53 = vadd.f32 %v546_v39, %v2400_v27  ;;  %v2463_v55 = vpop.f32.mrf.mxu0 }
  0xfa   :  { %v548_v46 = vpop.f32.mrf.mxu1 }
  0xfb   :  { %v768_v49 = vmax.f32 %v704_v40, 0.0  ;;  %v549_v51 = vadd.f32 %v548_v46, %v2404_v29  ;;  %v827_v60 = vpack.c.bf16 %v767_v44, %v765_v52  ;;  %v2466_v62 = vpop.f32.mrf.mxu0  ;;  %v705_v27 = vadd.f32 %v2423_v45, %v547_v53 }
  0xfc   :  { %v550_v54 = vpop.f32.mrf.mxu1 }
  0xfd   :  { %v551_v57 = vadd.f32 %v550_v54, %v2408_v32  ;;  %v828_v58 = vpack.c.bf16 %v768_v49, %v766_v24  ;;  %v706_v63 = vadd.f32 %v2421_v43, %v549_v51  ;;  %v2472_v3 = vpop.f32.mrf.mxu0  ;;  %v769_v31 = vmax.f32 %v705_v27, 0.0 }
  0xfe   :  { %v552_v59 = vpop.f32.mrf.mxu1 }
  0xff   :  { %v707_v0 = vadd.f32 %v2423_v45, %v551_v57  ;;  %v553_v29 = vadd.f32 %v552_v59, %v2412_v34  ;;  %1032 = vmatprep.mubr.bf16.mxu0 %v828_v58  ;;  %v2475_v12 = vpop.f32.mrf.mxu0  ;;  %v770_v14 = vmax.f32 %v706_v63, 0.0 }
 0x100   :  { %v556_v2 = vpop.f32.mrf.mxu1  ;;  %1033 = vmatmul.mubr.bf16.gmra.mxu0 %v827_v60 }
 0x101   :  { %v708_v32 = vadd.f32 %v2421_v43, %v553_v29  ;;  %v771_v4 = vmax.f32 %v707_v0, 0.0  ;;  %v557_v34 = vadd.f32 %v556_v2, %v2414_v38  ;;  %v2479_v36 = vpop.f32.mrf.mxu0 }
 0x102   :  { %v558_v5 = vpop.f32.mrf.mxu1 }
 0x103   :  { %v772_v16 = vmax.f32 %v708_v32, 0.0  ;;  %v559_v26 = vadd.f32 %v558_v5, %v2419_v41  ;;  %v829_v40 = vpack.c.bf16 %v771_v4, %v769_v31  ;;  %v2482_v42 = vpop.f32.mrf.mxu0  ;;  %v709_v41 = vadd.f32 %v2423_v45, %v557_v34 }
 0x104   :  { %v560_v20 = vpop.f32.mrf.mxu1 }
 0x105   :  { %v561_v18 = vadd.f32 %v560_v20, %v2425_v47  ;;  %v830_v37 = vpack.c.bf16 %v772_v16, %v770_v14  ;;  %v710_v44 = vadd.f32 %v2421_v43, %v559_v26  ;;  %v2488_v49 = vpop.f32.mrf.mxu0  ;;  %v773_v59 = vmax.f32 %v709_v41, 0.0 }
 0x106   :  { %v562_v39 = vpop.f32.mrf.mxu1 }
 0x107   :  { %v711_v46 = vadd.f32 %v2423_v45, %v561_v18  ;;  %v563_v24 = vadd.f32 %v562_v39, %v2427_v50  ;;  %1040 = vmatprep.mubr.bf16.mxu0 %v830_v37  ;;  %v2491_v53 = vpop.f32.mrf.mxu0  ;;  %v774_v54 = vmax.f32 %v710_v44, 0.0 }
 0x108   :  { %v566_v38 = vpop.f32.mrf.mxu1  ;;  %1041 = vmatmul.mubr.bf16.gmra.mxu0 %v829_v40 }
 0x109   :  { %v712_v47 = vadd.f32 %v2421_v43, %v563_v24  ;;  %v775_v51 = vmax.f32 %v711_v46, 0.0  ;;  %v567_v50 = vadd.f32 %v566_v38, %v2432_v56  ;;  %v2495_v63 = vpop.f32.mrf.mxu0 }
 0x10a   :  { %v568_v52 = vpop.f32.mrf.mxu1 }
 0x10b   :  { %v776_v57 = vmax.f32 %v712_v47, 0.0  ;;  %v569_v58 = vadd.f32 %v568_v52, %v2438_v61  ;;  %v831_v2 = vpack.c.bf16 %v775_v51, %v773_v59  ;;  %v2498_v32 = vpop.f32.mrf.mxu0  ;;  %v713_v61 = vadd.f32 %v2423_v45, %v567_v50 }
 0x10c   :  { %v570_v60 = vpop.f32.mrf.mxu1 }
 0x10d   :  { %v571_v0 = vadd.f32 %v570_v60, %v2443_v1  ;;  %v832_v29 = vpack.c.bf16 %v776_v57, %v774_v54  ;;  %v714_v4 = vadd.f32 %v2421_v43, %v569_v58  ;;  %v2504_v16 = vpop.f32.mrf.mxu0  ;;  %v777_v39 = vmax.f32 %v713_v61, 0.0 }
 0x10e   :  { %v572_v27 = vpop.f32.mrf.mxu1 }
 0x10f   :  { %v715_v5 = vadd.f32 %v2423_v45, %v571_v0  ;;  %v573_v14 = vadd.f32 %v572_v27, %v2448_v35  ;;  %1048 = vmatprep.mubr.bf16.mxu0 %v832_v29  ;;  %v2507_v34 = vpop.f32.mrf.mxu0  ;;  %v778_v20 = vmax.f32 %v714_v4, 0.0 }
 0x110   :  { %v576_v56 = vpop.f32.mrf.mxu1  ;;  %1049 = vmatmul.mubr.bf16.gmra.mxu0 %v831_v2 }
 0x111   :  { %v716_v1 = vadd.f32 %v2421_v43, %v573_v14  ;;  %v779_v26 = vmax.f32 %v715_v5, 0.0  ;;  %v577_v35 = vadd.f32 %v576_v56, %v2453_v22  ;;  %v2511_v44 = vpop.f32.mrf.mxu0 }
 0x112   :  { %v578_v31 = vpop.f32.mrf.mxu1 }
 0x113   :  { %v780_v18 = vmax.f32 %v716_v1, 0.0  ;;  %v579_v37 = vadd.f32 %v578_v31, %v2459_v48  ;;  %v833_v38 = vpack.c.bf16 %v779_v26, %v777_v39  ;;  %v2514_v47 = vpop.f32.mrf.mxu0  ;;  %v717_v48 = vadd.f32 %v2423_v45, %v577_v35 }
 0x114   :  { %v580_v40 = vpop.f32.mrf.mxu1 }
 0x115   :  { %v581_v46 = vadd.f32 %v580_v40, %v2463_v55  ;;  %v834_v24 = vpack.c.bf16 %v780_v18, %v778_v20  ;;  %v718_v51 = vadd.f32 %v2421_v43, %v579_v37  ;;  %v2521_v59 = vpop.f32.mrf.mxu0  ;;  %v781_v29 = vmax.f32 %v717_v48, 0.0 }
 0x116   :  { %v582_v41 = vpop.f32.mrf.mxu1 }
 0x117   :  { %v719_v52 = vadd.f32 %v2423_v45, %v581_v46  ;;  %v583_v54 = vadd.f32 %v582_v41, %v2466_v62  ;;  %1056 = vmatprep.mubr.bf16.mxu0 %v834_v24  ;;  %v782_v50 = vmax.f32 %v718_v51, 0.0  ;;  %v345_v61 = vpop.f32.mrf.mxu0 }
 0x118   :  { %v586_v22 = vpop.f32.mrf.mxu1  ;;  %1057 = vmatmul.mubr.bf16.gmra.mxu0 %v833_v38 }
 0x119   :  { %v720_v57 = vadd.f32 %v2421_v43, %v583_v54  ;;  %v783_v58 = vmax.f32 %v719_v52, 0.0  ;;  %v587_v27 = vadd.f32 %v586_v22, %v2472_v3 }
 0x11a   :  { %v588_v55 = vpop.f32.mrf.mxu1 }
 0x11b   :  { %v784_v60 = vmax.f32 %v720_v57, 0.0  ;;  %v589_v0 = vadd.f32 %v588_v55, %v2475_v12  ;;  %v835_v14 = vpack.c.bf16 %v783_v58, %v781_v29  ;;  %v721_v31 = vadd.f32 %v2423_v45, %v587_v27 }
 0x11c   :  { %v590_v2 = vpop.f32.mrf.mxu1 }
 0x11d   :  { %v591_v62 = vadd.f32 %v590_v2, %v2479_v36  ;;  %v836_v4 = vpack.c.bf16 %v784_v60, %v782_v50  ;;  %v722_v56 = vadd.f32 %v2421_v43, %v589_v0  ;;  %v347_v36 = vpop.f32.mrf.mxu0  ;;  %v785_v40 = vmax.f32 %v721_v31, 0.0 }
 0x11e   :  { %v592_v5 = vpop.f32.mrf.mxu1 }
 0x11f   :  { %v723_v1 = vadd.f32 %v2423_v45, %v591_v62  ;;  %v593_v26 = vadd.f32 %v592_v5, %v2482_v42  ;;  %1064 = vmatprep.mubr.bf16.mxu0 %v836_v4  ;;  %v786_v37 = vmax.f32 %v722_v56, 0.0  ;;  %v349_v52 = vpop.f32.mrf.mxu0 }
 0x120   :  { %v596_v12 = vpop.f32.mrf.mxu1  ;;  %1065 = vmatmul.mubr.bf16.gmra.mxu0 %v835_v14 }
 0x121   :  { %v724_v3 = vadd.f32 %v2421_v43, %v593_v26  ;;  %v787_v20 = vmax.f32 %v723_v1, 0.0  ;;  %v597_v46 = vadd.f32 %v596_v12, %v2488_v49 }
 0x122   :  { %v598_v18 = vpop.f32.mrf.mxu1 }
 0x123   :  { %v788_v39 = vmax.f32 %v724_v3, 0.0  ;;  %v599_v35 = vadd.f32 %v598_v18, %v2491_v53  ;;  %v837_v51 = vpack.c.bf16 %v787_v20, %v785_v40  ;;  %v725_v57 = vadd.f32 %v2423_v45, %v597_v46 }
 0x124   :  { %v600_v24 = vpop.f32.mrf.mxu1 }
 0x125   :  { %v601_v42 = vadd.f32 %v600_v24, %v2495_v63  ;;  %v838_v41 = vpack.c.bf16 %v788_v39, %v786_v37  ;;  %v726_v54 = vadd.f32 %v2421_v43, %v599_v35  ;;  %v353_v63 = vpop.f32.mrf.mxu0  ;;  %v789_v29 = vmax.f32 %v725_v57, 0.0 }
 0x126   :  { %v602_v38 = vpop.f32.mrf.mxu1 }
 0x127   :  { %v727_v48 = vadd.f32 %v2423_v45, %v601_v42  ;;  %v603_v22 = vadd.f32 %v602_v38, %v2498_v32  ;;  %1072 = vmatprep.mubr.bf16.mxu0 %v838_v41  ;;  %v790_v50 = vmax.f32 %v726_v54, 0.0  ;;  %v355_v14 = vpop.f32.mrf.mxu0 }
 0x128   :  { %v606_v53 = vpop.f32.mrf.mxu1  ;;  %1073 = vmatmul.mubr.bf16.gmra.mxu0 %v837_v51 }
 0x129   :  { %v728_v49 = vadd.f32 %v2421_v43, %v603_v22  ;;  %v791_v58 = vmax.f32 %v727_v48, 0.0  ;;  %v607_v27 = vadd.f32 %v606_v53, %v2504_v16 }
 0x12a   :  { %v608_v55 = vpop.f32.mrf.mxu1 }
 0x12b   :  { %v792_v60 = vmax.f32 %v728_v49, 0.0  ;;  %v609_v0 = vadd.f32 %v608_v55, %v2507_v34  ;;  %v839_v5 = vpack.c.bf16 %v791_v58, %v789_v29  ;;  %v729_v31 = vadd.f32 %v2423_v45, %v607_v27 }
 0x12c   :  { %v610_v2 = vpop.f32.mrf.mxu1 }
 0x12d   :  { %v611_v32 = vadd.f32 %v610_v2, %v2511_v44  ;;  %v840_v62 = vpack.c.bf16 %v792_v60, %v790_v50  ;;  %v730_v56 = vadd.f32 %v2421_v43, %v609_v0  ;;  %v357_v44 = vpop.f32.mrf.mxu0  ;;  %v793_v39 = vmax.f32 %v729_v31, 0.0 }
 0x12e   :  { %v612_v4 = vpop.f32.mrf.mxu1 }
 0x12f   :  { %v731_v1 = vadd.f32 %v2423_v45, %v611_v32  ;;  %v613_v26 = vadd.f32 %v612_v4, %v2514_v47  ;;  %1080 = vmatprep.mubr.bf16.mxu0 %v840_v62  ;;  %v794_v20 = vmax.f32 %v730_v56, 0.0  ;;  %v359_v41 = vpop.f32.mrf.mxu0 }
 0x130   :  { %v616_v34 = vpop.f32.mrf.mxu1  ;;  %1081 = vmatmul.mubr.bf16.gmra.mxu0 %v839_v5 }
 0x131   :  { %v732_v16 = vadd.f32 %v2421_v43, %v613_v26  ;;  %v795_v12 = vmax.f32 %v731_v1, 0.0  ;;  %v617_v35 = vadd.f32 %v616_v34, %v2521_v59  ;;  %v363_v53 = vpop.f32.mrf.mxu0  ;;  %v1971_v1 = vld [vmem:[%s2918_s7 + $0x10] sm:$0xff]  }
 0x132   :  { %v618_v3 = vpop.f32.mrf.mxu1 }
 0x133   :  { %v796_v18 = vmax.f32 %v732_v16, 0.0  ;;  %v619_v37 = vadd.f32 %v618_v3, %v345_v61  ;;  %v841_v42 = vpack.c.bf16 %v795_v12, %v793_v39  ;;  %v733_v48 = vadd.f32 %v2423_v45, %v617_v35  ;;  %v365_v27 = vpop.f32.mrf.mxu0  ;;  %v1972_v35 = vld [vmem:[%s2918_s7 + $0x8] sm:$0xff]  }
 0x134   :  { %v620_v40 = vpop.f32.mrf.mxu1 }
 0x135   :  { %v621_v46 = vadd.f32 %v620_v40, %v347_v36  ;;  %v842_v24 = vpack.c.bf16 %v796_v18, %v794_v20  ;;  %v734_v38 = vadd.f32 %v2421_v43, %v619_v37  ;;  %v797_v55 = vmax.f32 %v733_v48, 0.0  ;;  %v367_v31 = vpop.f32.mrf.mxu0  ;;  %v1973_v48 = vld [vmem:[%s2918_s7] sm:$0xff]  }
 0x136   :  { %v622_v47 = vpop.f32.mrf.mxu1 }
 0x137   :  { %v735_v51 = vadd.f32 %v2423_v45, %v621_v46  ;;  %v623_v54 = vadd.f32 %v622_v47, %v349_v52  ;;  %1088 = vmatprep.mubr.bf16.mxu0 %v842_v24  ;;  %v798_v36 = vmax.f32 %v734_v38, 0.0  ;;  %v1970_v52 = vld [vmem:[%s2918_s7 + $0x18] sm:$0xff]   ;;  %v369_v40 = vpop.f32.mrf.mxu0 }
 0x138   :  { %v626_v22 = vpop.f32.mrf.mxu1  ;;  %1089 = vmatmul.mubr.bf16.gmra.mxu0 %v841_v42  ;;  %1883 = vmatprep.subr.bf16.mxu1 %v1970_v52 }
 0x139   :  { %v736_v61 = vadd.f32 %v2421_v43, %v623_v54  ;;  %v799_v57 = vmax.f32 %v735_v51, 0.0  ;;  %v627_v50 = vadd.f32 %v626_v22, %v353_v63  ;;  %1884 = vmatpush3.bf16.msra.mxu1 %v1970_v52 }
 0x13a   :  { %v628_v59 = vpop.f32.mrf.mxu1  ;;  %1885 = vmatprep.subr.bf16.mxu1 %v1971_v1 }
 0x13b   :  { %v800_v49 = vmax.f32 %v736_v61, 0.0  ;;  %v629_v58 = vadd.f32 %v628_v59, %v355_v14  ;;  %v843_v32 = vpack.c.bf16 %v799_v57, %v797_v55  ;;  %v737_v14 = vadd.f32 %v2423_v45, %v627_v50 }
 0x13c   :  { %v630_v60 = vpop.f32.mrf.mxu1 }
 0x13d   :  { %v631_v0 = vadd.f32 %v630_v60, %v357_v44  ;;  %v844_v29 = vpack.c.bf16 %v800_v49, %v798_v36  ;;  %v738_v62 = vadd.f32 %v2421_v43, %v629_v58  ;;  %v801_v44 = vmax.f32 %v737_v14, 0.0  ;;  %1886 = vmatpush3.bf16.msra.mxu1 %v1971_v1 }
 0x13e   :  { %v632_v2 = vpop.f32.mrf.mxu1  ;;  %1887 = vmatprep.subr.bf16.mxu1 %v1972_v35 }
 0x13f   :  { %v739_v4 = vadd.f32 %v2423_v45, %v631_v0  ;;  %v633_v5 = vadd.f32 %v632_v2, %v359_v41  ;;  %1096 = vmatprep.mubr.bf16.mxu0 %v844_v29  ;;  %v802_v16 = vmax.f32 %v738_v62, 0.0 }
 0x140   :  { %v636_v63 = vpop.f32.mrf.mxu1  ;;  %1097 = vmatmul.mubr.bf16.gmra.mxu0 %v843_v32 }
 0x141   :  { %v740_v56 = vadd.f32 %v2421_v43, %v633_v5  ;;  %v803_v26 = vmax.f32 %v739_v4, 0.0  ;;  %v637_v20 = vadd.f32 %v636_v63, %v363_v53  ;;  %1888 = vmatpush3.bf16.msra.mxu1 %v1972_v35 }
 0x142   :  { %v638_v34 = vpop.f32.mrf.mxu1  ;;  %1889 = vmatprep.subr.bf16.mxu1 %v1973_v48 }
 0x143   :  { %v804_v12 = vmax.f32 %v740_v56, 0.0  ;;  %v639_v3 = vadd.f32 %v638_v34, %v365_v27  ;;  %v845_v24 = vpack.c.bf16 %v803_v26, %v801_v44  ;;  %v741_v38 = vadd.f32 %v2423_v45, %v637_v20 }
 0x144   :  { %v640_v18 = vpop.f32.mrf.mxu1 }
 0x145   :  { %v641_v37 = vadd.f32 %v640_v18, %v367_v31  ;;  %v846_v39 = vpack.c.bf16 %v804_v12, %v802_v16  ;;  %v742_v47 = vadd.f32 %v2421_v43, %v639_v3  ;;  %v805_v36 = vmax.f32 %v741_v38, 0.0  ;;  %1890 = vmatpush3.bf16.msra.mxu1 %v1973_v48 }
 0x146   :  { %v642_v46 = vpop.f32.mrf.mxu1 }
 0x147   :  { %v743_v42 = vadd.f32 %v2423_v45, %v641_v37  ;;  %v643_v41 = vadd.f32 %v642_v46, %v369_v40  ;;  %1104 = vmatprep.mubr.bf16.mxu0 %v846_v39  ;;  %v806_v57 = vmax.f32 %v742_v47, 0.0 }
 0x148   :  { %v646_v51 = vpop.f32.mrf.mxu1  ;;  %1105 = vmatmul.mubr.bf16.gmra.mxu0 %v845_v24 }
 0x149   :  { %v744_v54 = vadd.f32 %v2421_v43, %v643_v41  ;;  %v807_v22 = vmax.f32 %v743_v42, 0.0  ;;  %v647_v49 = vadd.f32 %v646_v51, %v2374_v6 }
 0x14a   :  { %v648_v61 = vpop.f32.mrf.mxu1 }
 0x14b   :  { %v808_v59 = vmax.f32 %v744_v54, 0.0  ;;  %v649_v53 = vadd.f32 %v648_v61, %v2376_v7  ;;  %v847_v0 = vpack.c.bf16 %v807_v22, %v805_v36  ;;  %v745_v7 = vadd.f32 %v2423_v45, %v647_v49 }
 0x14c   :  { %v650_v58 = vpop.f32.mrf.mxu1 }
 0x14d   :  { %v651_v55 = vadd.f32 %v650_v58, %v2378_v8  ;;  %v848_v50 = vpack.c.bf16 %v808_v59, %v806_v57  ;;  %v746_v29 = vadd.f32 %v2421_v43, %v649_v53  ;;  %v809_v14 = vmax.f32 %v745_v7, 0.0 }
 0x14e   :  { %v652_v60 = vpop.f32.mrf.mxu1 }
 0x14f   :  { %v747_v52 = vadd.f32 %v2423_v45, %v651_v55  ;;  %v653_v27 = vadd.f32 %v652_v60, %v2380_v9  ;;  %1112 = vmatprep.mubr.bf16.mxu0 %v848_v50  ;;  %v810_v4 = vmax.f32 %v746_v29, 0.0 }
 0x150   :  { %v656_v2 = vpop.f32.mrf.mxu1  ;;  %1113 = vmatmul.mubr.bf16.gmra.mxu0 %v847_v0 }
 0x151   :  { %v748_v6 = vadd.f32 %v2421_v43, %v653_v27  ;;  %v811_v32 = vmax.f32 %v747_v52, 0.0  ;;  %v657_v63 = vadd.f32 %v656_v2, %v2382_v10 }
 0x152   :  { %v658_v62 = vpop.f32.mrf.mxu1 }
 0x153   :  { %v812_v8 = vmax.f32 %v748_v6, 0.0  ;;  %v659_v5 = vadd.f32 %v658_v62, %v2384_v11  ;;  %v849_v31 = vpack.c.bf16 %v811_v32, %v809_v14  ;;  %v749_v3 = vadd.f32 %v2423_v45, %v657_v63 }
 0x154   :  { %v660_v56 = vpop.f32.mrf.mxu1 }
 0x155   :  { %v661_v1 = vadd.f32 %v660_v56, %v2386_v13  ;;  %v850_v9 = vpack.c.bf16 %v812_v8, %v810_v4  ;;  %v750_v34 = vadd.f32 %v2421_v43, %v659_v5  ;;  %v813_v39 = vmax.f32 %v749_v3, 0.0 }
 0x156   :  { %v662_v26 = vpop.f32.mrf.mxu1 }
 0x157   :  { %v751_v16 = vadd.f32 %v2423_v45, %v661_v1  ;;  %v663_v12 = vadd.f32 %v662_v26, %v2388_v15  ;;  %1120 = vmatprep.mubr.bf16.mxu0 %v850_v9  ;;  %v814_v18 = vmax.f32 %v750_v34, 0.0 }
 0x158   :  { %v666_v44 = vpop.f32.mrf.mxu1  ;;  %1121 = vmatmul.mubr.bf16.gmra.mxu0 %v849_v31 }
 0x159   :  { %v752_v11 = vadd.f32 %v2421_v43, %v663_v12  ;;  %v815_v10 = vmax.f32 %v751_v16, 0.0  ;;  %v667_v35 = vadd.f32 %v666_v44, %v2390_v17 }
 0x15a   :  { %v668_v20 = vpop.f32.mrf.mxu1 }
 0x15b   :  { %v816_v13 = vmax.f32 %v752_v11, 0.0  ;;  %v669_v37 = vadd.f32 %v668_v20, %v2392_v19  ;;  %v851_v47 = vpack.c.bf16 %v815_v10, %v813_v39  ;;  %v753_v51 = vadd.f32 %v2423_v45, %v667_v35 }
 0x15c   :  { %v670_v40 = vpop.f32.mrf.mxu1 }
 0x15d   :  { %v671_v46 = vadd.f32 %v670_v40, %v2394_v21  ;;  %v852_v15 = vpack.c.bf16 %v816_v13, %v814_v18  ;;  %v754_v42 = vadd.f32 %v2421_v43, %v669_v37  ;;  %v817_v57 = vmax.f32 %v753_v51, 0.0 }
 0x15e   :  { %v672_v24 = vpop.f32.mrf.mxu1 }
 0x15f   :  { %v755_v41 = vadd.f32 %v2423_v45, %v671_v46  ;;  %v673_v38 = vadd.f32 %v672_v24, %v2396_v23  ;;  %1128 = vmatprep.mubr.bf16.mxu0 %v852_v15  ;;  %v818_v22 = vmax.f32 %v754_v42, 0.0 }
 0x160   :  { %v676_v54 = vpop.f32.mrf.mxu1  ;;  %1129 = vmatmul.mubr.bf16.gmra.mxu0 %v851_v47 }
 0x161   :  { %v756_v19 = vadd.f32 %v2421_v43, %v673_v38  ;;  %v819_v17 = vmax.f32 %v755_v41, 0.0  ;;  %v677_v59 = vadd.f32 %v676_v54, %v2398_v25 }
 0x162   :  { %v678_v48 = vpop.f32.mrf.mxu1 }
 0x163   :  { %v820_v21 = vmax.f32 %v756_v19, 0.0  ;;  %v679_v61 = vadd.f32 %v678_v48, %v2402_v28  ;;  %v853_v58 = vpack.c.bf16 %v819_v17, %v817_v57  ;;  %v757_v0 = vadd.f32 %v2423_v45, %v677_v59 }
 0x164   :  { %v680_v53 = vpop.f32.mrf.mxu1 }
 0x165   :  { %v681_v36 = vadd.f32 %v680_v53, %v2406_v30  ;;  %v854_v23 = vpack.c.bf16 %v820_v21, %v818_v22  ;;  %v758_v55 = vadd.f32 %v2421_v43, %v679_v61  ;;  %v821_v27 = vmax.f32 %v757_v0, 0.0 }
 0x166   :  { %v682_v49 = vpop.f32.mrf.mxu1 }
 0x167   :  { %v759_v50 = vadd.f32 %v2423_v45, %v681_v36  ;;  %v683_v60 = vadd.f32 %v682_v49, %v2410_v33  ;;  %1136 = vmatprep.mubr.bf16.mxu0 %v854_v23  ;;  %v822_v25 = vmax.f32 %v758_v55, 0.0  ;;  %v2607_v33 = vld [vmem:[%s2919_s6] ss:$0 sm:$0xff] }
 0x168   :  { %1137 = vmatmul.mubr.bf16.gmra.mxu0 %v853_v58 }
 0x169   :  { %v760_v28 = vadd.f32 %v2421_v43, %v683_v60  ;;  %v823_v29 = vmax.f32 %v759_v50, 0.0 }
 0x16b   :  { %v824_v52 = vmax.f32 %v760_v28, 0.0  ;;  %v855_v7 = vpack.c.bf16 %v823_v29, %v821_v27 }
 0x16d   :  { %v856_v30 = vpack.c.bf16 %v824_v52, %v822_v25 }
 0x16f   :  { %1144 = vmatprep.mubr.bf16.mxu0 %v856_v30 }
 0x170   :  { %1145 = vmatmul.mubr.bf16.gmra.mxu0 %v855_v7 }
 0x1b8   :  { %v1755_v2 = vpop.f32.mrf.mxu0 }
 0x1ba   :  { %v1756_v6 = vpop.f32.mrf.mxu0 }
 0x1bb   :  { %v1757_v32 = vadd.f32 %v1756_v6, %v1755_v2 }
 0x1bc   :  { %v1758_v45 = vpop.f32.mrf.mxu0 }
 0x1bd   :  { %v1027_v43 = vadd.f32 %v1757_v32, %v2607_v33 }
 0x1be   :  { %v1759_v62 = vpop.f32.mrf.mxu0 }
 0x1bf   :  { %v1760_v4 = vadd.f32 %v1759_v62, %v1758_v45  ;;  %v1153_v63 = vmax.f32 %v1027_v43, 0.0 }
 0x1c0   :  { %v1761_v8 = vpop.f32.mrf.mxu0 }
 0x1c1   :  { %v1030_v5 = vadd.f32 %v1760_v4, %v2607_v33 }
 0x1c2   :  { %v1762_v14 = vpop.f32.mrf.mxu0 }
 0x1c3   :  { %v1154_v56 = vmax.f32 %v1030_v5, 0.0  ;;  %v1763_v1 = vadd.f32 %v1762_v14, %v1761_v8 }
 0x1c4   :  { %v1764_v9 = vpop.f32.mrf.mxu0 }
 0x1c5   :  { %v1185_v26 = vpack.c.bf16 %v1154_v56, %v1153_v63  ;;  %v1035_v34 = vadd.f32 %v1763_v1, %v2607_v33 }
 0x1c6   :  { %v1765_v31 = vpop.f32.mrf.mxu0 }
 0x1c7   :  { %v1766_v16 = vadd.f32 %v1765_v31, %v1764_v9  ;;  %1891 = vmatprep.mubr.bf16.mxu1 %v1185_v26  ;;  %v1155_v11 = vmax.f32 %v1035_v34, 0.0 }
 0x1c8   :  { %v1767_v12 = vpop.f32.mrf.mxu0 }
 0x1c9   :  { %v1038_v3 = vadd.f32 %v1766_v16, %v2607_v33 }
 0x1ca   :  { %v1768_v44 = vpop.f32.mrf.mxu0 }
 0x1cb   :  { %v1156_v10 = vmax.f32 %v1038_v3, 0.0  ;;  %v1769_v20 = vadd.f32 %v1768_v44, %v1767_v12 }
 0x1cc   :  { %v1770_v18 = vpop.f32.mrf.mxu0 }
 0x1cd   :  { %v1186_v13 = vpack.c.bf16 %v1156_v10, %v1155_v11  ;;  %v1043_v39 = vadd.f32 %v1769_v20, %v2607_v33 }
 0x1ce   :  { %v1771_v37 = vpop.f32.mrf.mxu0 }
 0x1cf   :  { %v1772_v35 = vadd.f32 %v1771_v37, %v1770_v18  ;;  %1892 = vmatmul.mubr.bf16.vlgmr.msra.gmra.mxu1 %v1186_v13  ;;  %v1157_v24 = vmax.f32 %v1043_v39, 0.0 }
 0x1d0   :  { %v1773_v40 = vpop.f32.mrf.mxu0 }
 0x1d1   :  { %v1046_v46 = vadd.f32 %v1772_v35, %v2607_v33 }
 0x1d2   :  { %v1774_v15 = vpop.f32.mrf.mxu0 }
 0x1d3   :  { %v1158_v47 = vmax.f32 %v1046_v46, 0.0  ;;  %v1775_v42 = vadd.f32 %v1774_v15, %v1773_v40 }
 0x1d4   :  { %v1776_v41 = vpop.f32.mrf.mxu0 }
 0x1d5   :  { %v1187_v38 = vpack.c.bf16 %v1158_v47, %v1157_v24  ;;  %v1051_v54 = vadd.f32 %v1775_v42, %v2607_v33 }
 0x1d6   :  { %v1777_v51 = vpop.f32.mrf.mxu0 }
 0x1d7   :  { %v1778_v19 = vadd.f32 %v1777_v51, %v1776_v41  ;;  %1895 = vmatprep.mubr.bf16.mxu1 %v1187_v38  ;;  %v1159_v21 = vmax.f32 %v1051_v54, 0.0 }
 0x1d8   :  { %v1779_v17 = vpop.f32.mrf.mxu0 }
 0x1d9   :  { %v1054_v48 = vadd.f32 %v1778_v19, %v2607_v33 }
 0x1da   :  { %v1780_v22 = vpop.f32.mrf.mxu0 }
 0x1db   :  { %v1160_v61 = vmax.f32 %v1054_v48, 0.0  ;;  %v1781_v57 = vadd.f32 %v1780_v22, %v1779_v17 }
 0x1dc   :  { %v1782_v59 = vpop.f32.mrf.mxu0 }
 0x1dd   :  { %v1188_v53 = vpack.c.bf16 %v1160_v61, %v1159_v21  ;;  %v1059_v23 = vadd.f32 %v1781_v57, %v2607_v33 }
 0x1de   :  { %v1783_v36 = vpop.f32.mrf.mxu0 }
 0x1df   :  { %v1784_v49 = vadd.f32 %v1783_v36, %v1782_v59  ;;  %1896 = vmatmul.mubr.bf16.gmra.mxu1 %v1188_v53  ;;  %v1161_v60 = vmax.f32 %v1059_v23, 0.0 }
 0x1e0   :  { %v1785_v58 = vpop.f32.mrf.mxu0 }
 0x1e1   :  { %v1062_v55 = vadd.f32 %v1784_v49, %v2607_v33 }
 0x1e2   :  { %v1786_v50 = vpop.f32.mrf.mxu0 }
 0x1e3   :  { %v1162_v0 = vmax.f32 %v1062_v55, 0.0  ;;  %v1787_v28 = vadd.f32 %v1786_v50, %v1785_v58 }
 0x1e4   :  { %v1788_v29 = vpop.f32.mrf.mxu0 }
 0x1e5   :  { %v1189_v25 = vpack.c.bf16 %v1162_v0, %v1161_v60  ;;  %v1067_v27 = vadd.f32 %v1787_v28, %v2607_v33 }
 0x1e6   :  { %v1789_v52 = vpop.f32.mrf.mxu0 }
 0x1e7   :  { %v1790_v30 = vadd.f32 %v1789_v52, %v1788_v29  ;;  %1899 = vmatprep.mubr.bf16.mxu1 %v1189_v25  ;;  %v1163_v32 = vmax.f32 %v1067_v27, 0.0 }
 0x1e8   :  { %v1791_v7 = vpop.f32.mrf.mxu0 }
 0x1e9   :  { %v1070_v2 = vadd.f32 %v1790_v30, %v2607_v33 }
 0x1ea   :  { %v1792_v6 = vpop.f32.mrf.mxu0 }
 0x1eb   :  { %v1164_v45 = vmax.f32 %v1070_v2, 0.0  ;;  %v1793_v62 = vadd.f32 %v1792_v6, %v1791_v7 }
 0x1ec   :  { %v1794_v43 = vpop.f32.mrf.mxu0 }
 0x1ed   :  { %v1190_v4 = vpack.c.bf16 %v1164_v45, %v1163_v32  ;;  %v1075_v5 = vadd.f32 %v1793_v62, %v2607_v33 }
 0x1ee   :  { %v1795_v8 = vpop.f32.mrf.mxu0 }
 0x1ef   :  { %v1796_v14 = vadd.f32 %v1795_v8, %v1794_v43  ;;  %1900 = vmatmul.mubr.bf16.gmra.mxu1 %v1190_v4  ;;  %v1165_v9 = vmax.f32 %v1075_v5, 0.0 }
 0x1f0   :  { %v1797_v63 = vpop.f32.mrf.mxu0 }
 0x1f1   :  { %v1078_v56 = vadd.f32 %v1796_v14, %v2607_v33 }
 0x1f2   :  { %v1798_v1 = vpop.f32.mrf.mxu0 }
 0x1f3   :  { %v1166_v26 = vmax.f32 %v1078_v56, 0.0  ;;  %v1799_v31 = vadd.f32 %v1798_v1, %v1797_v63 }
 0x1f4   :  { %v1800_v34 = vpop.f32.mrf.mxu0 }
 0x1f5   :  { %v1191_v16 = vpack.c.bf16 %v1166_v26, %v1165_v9  ;;  %v1083_v3 = vadd.f32 %v1799_v31, %v2607_v33 }
 0x1f6   :  { %v1801_v12 = vpop.f32.mrf.mxu0 }
 0x1f7   :  { %v1802_v44 = vadd.f32 %v1801_v12, %v1800_v34  ;;  %1903 = vmatprep.mubr.bf16.mxu1 %v1191_v16  ;;  %v1167_v18 = vmax.f32 %v1083_v3, 0.0 }
 0x1f8   :  { %v1803_v11 = vpop.f32.mrf.mxu0 }
 0x1f9   :  { %v1086_v10 = vadd.f32 %v1802_v44, %v2607_v33 }
 0x1fa   :  { %v1804_v20 = vpop.f32.mrf.mxu0 }
 0x1fb   :  { %v1168_v13 = vmax.f32 %v1086_v10, 0.0  ;;  %v1805_v37 = vadd.f32 %v1804_v20, %v1803_v11 }
 0x1fc   :  { %v1806_v39 = vpop.f32.mrf.mxu0 }
 0x1fd   :  { %v1192_v35 = vpack.c.bf16 %v1168_v13, %v1167_v18  ;;  %v1091_v46 = vadd.f32 %v1805_v37, %v2607_v33 }
 0x1fe   :  { %v1807_v40 = vpop.f32.mrf.mxu0 }
 0x1ff   :  { %v1808_v15 = vadd.f32 %v1807_v40, %v1806_v39  ;;  %1904 = vmatmul.mubr.bf16.gmra.mxu1 %v1192_v35  ;;  %v1169_v41 = vmax.f32 %v1091_v46, 0.0 }
 0x200   :  { %v1809_v24 = vpop.f32.mrf.mxu0 }
 0x201   :  { %v1094_v47 = vadd.f32 %v1808_v15, %v2607_v33 }
 0x202   :  { %v1810_v42 = vpop.f32.mrf.mxu0 }
 0x203   :  { %v1170_v38 = vmax.f32 %v1094_v47, 0.0  ;;  %v1811_v51 = vadd.f32 %v1810_v42, %v1809_v24 }
 0x204   :  { %v1812_v54 = vpop.f32.mrf.mxu0 }
 0x205   :  { %v1193_v19 = vpack.c.bf16 %v1170_v38, %v1169_v41  ;;  %v1099_v48 = vadd.f32 %v1811_v51, %v2607_v33 }
 0x206   :  { %v1813_v17 = vpop.f32.mrf.mxu0 }
 0x207   :  { %v1814_v22 = vadd.f32 %v1813_v17, %v1812_v54  ;;  %1907 = vmatprep.mubr.bf16.mxu1 %v1193_v19  ;;  %v1171_v59 = vmax.f32 %v1099_v48, 0.0 }
 0x208   :  { %v1815_v21 = vpop.f32.mrf.mxu0 }
 0x209   :  { %v1102_v61 = vadd.f32 %v1814_v22, %v2607_v33 }
 0x20a   :  { %v1816_v57 = vpop.f32.mrf.mxu0 }
 0x20b   :  { %v1172_v53 = vmax.f32 %v1102_v61, 0.0  ;;  %v1817_v36 = vadd.f32 %v1816_v57, %v1815_v21 }
 0x20c   :  { %v1818_v23 = vpop.f32.mrf.mxu0 }
 0x20d   :  { %v1194_v49 = vpack.c.bf16 %v1172_v53, %v1171_v59  ;;  %v1107_v55 = vadd.f32 %v1817_v36, %v2607_v33 }
 0x20e   :  { %v1819_v58 = vpop.f32.mrf.mxu0 }
 0x20f   :  { %v1820_v50 = vadd.f32 %v1819_v58, %v1818_v23  ;;  %1908 = vmatmul.mubr.bf16.gmra.mxu1 %v1194_v49  ;;  %v1173_v29 = vmax.f32 %v1107_v55, 0.0  ;;  %v2644_v49 = vld [vmem:[%s2920_s8] ss:$0 sm:$0xff] }
 0x210   :  { %v1821_v60 = vpop.f32.mrf.mxu0 }
 0x211   :  { %v1110_v0 = vadd.f32 %v1820_v50, %v2607_v33 }
 0x212   :  { %v1822_v28 = vpop.f32.mrf.mxu0 }
 0x213   :  { %v1174_v25 = vmax.f32 %v1110_v0, 0.0  ;;  %v1823_v52 = vadd.f32 %v1822_v28, %v1821_v60  ;;  %v2650_v60 = vld [vmem:[%s2921_s9] ss:$0 sm:$0xff]  ;;  %v16_v28 = vstv %s2922_s10 }
 0x214   :  { %v1824_v27 = vpop.f32.mrf.mxu0  ;;  %17 = vst [vmem:[#allocation2] sm:$0x1] %v16_v28 }
 0x215   :  { %v1195_v30 = vpack.c.bf16 %v1174_v25, %v1173_v29  ;;  %v1115_v2 = vadd.f32 %v1823_v52, %v2607_v33 }
 0x216   :  { %v1825_v7 = vpop.f32.mrf.mxu0 }
 0x217   :  { %v1826_v6 = vadd.f32 %v1825_v7, %v1824_v27  ;;  %1911 = vmatprep.mubr.bf16.mxu1 %v1195_v30  ;;  %v1175_v43 = vmax.f32 %v1115_v2, 0.0 }
 0x218   :  { %v1827_v32 = vpop.f32.mrf.mxu0 }
 0x219   :  { %v1118_v45 = vadd.f32 %v1826_v6, %v2607_v33 }
 0x21a   :  { %v1828_v62 = vpop.f32.mrf.mxu0 }
 0x21b   :  { %v1176_v4 = vmax.f32 %v1118_v45, 0.0  ;;  %v1829_v8 = vadd.f32 %v1828_v62, %v1827_v32 }
 0x21c   :  { %v1830_v5 = vpop.f32.mrf.mxu0 }
 0x21d   :  { %v1196_v14 = vpack.c.bf16 %v1176_v4, %v1175_v43  ;;  %v1123_v56 = vadd.f32 %v1829_v8, %v2607_v33 }
 0x21e   :  { %v1831_v63 = vpop.f32.mrf.mxu0 }
 0x21f   :  { %v1832_v1 = vadd.f32 %v1831_v63, %v1830_v5  ;;  %1912 = vmatmul.mubr.bf16.gmra.mxu1 %v1196_v14  ;;  %v1177_v34 = vmax.f32 %v1123_v56, 0.0 }
 0x220   :  { %v1833_v9 = vpop.f32.mrf.mxu0 }
 0x221   :  { %v1126_v26 = vadd.f32 %v1832_v1, %v2607_v33 }
 0x222   :  { %v1834_v31 = vpop.f32.mrf.mxu0 }
 0x223   :  { %v1178_v16 = vmax.f32 %v1126_v26, 0.0  ;;  %v1835_v12 = vadd.f32 %v1834_v31, %v1833_v9 }
 0x224   :  { %v1836_v3 = vpop.f32.mrf.mxu0 }
 0x225   :  { %v1197_v44 = vpack.c.bf16 %v1178_v16, %v1177_v34  ;;  %v1131_v10 = vadd.f32 %v1835_v12, %v2607_v33 }
 0x226   :  { %v1837_v11 = vpop.f32.mrf.mxu0 }
 0x227   :  { %v1838_v20 = vadd.f32 %v1837_v11, %v1836_v3  ;;  %1915 = vmatprep.mubr.bf16.mxu1 %v1197_v44  ;;  %v1179_v39 = vmax.f32 %v1131_v10, 0.0 }
 0x228   :  { %v1839_v18 = vpop.f32.mrf.mxu0 }
 0x229   :  { %v1134_v13 = vadd.f32 %v1838_v20, %v2607_v33 }
 0x22a   :  { %v1840_v37 = vpop.f32.mrf.mxu0 }
 0x22b   :  { %v1180_v35 = vmax.f32 %v1134_v13, 0.0  ;;  %v1841_v40 = vadd.f32 %v1840_v37, %v1839_v18 }
 0x22c   :  { %v1842_v46 = vpop.f32.mrf.mxu0 }
 0x22d   :  { %v1198_v15 = vpack.c.bf16 %v1180_v35, %v1179_v39  ;;  %v1139_v47 = vadd.f32 %v1841_v40, %v2607_v33 }
 0x22e   :  { %v1843_v24 = vpop.f32.mrf.mxu0 }
 0x22f   :  { %v1844_v42 = vadd.f32 %v1843_v24, %v1842_v46  ;;  %1916 = vmatmul.mubr.bf16.gmra.mxu1 %v1198_v15  ;;  %v1181_v54 = vmax.f32 %v1139_v47, 0.0 }
 0x230   :  { %v1845_v41 = vpop.f32.mrf.mxu0 }
 0x231   :  { %v1142_v38 = vadd.f32 %v1844_v42, %v2607_v33 }
 0x232   :  { %v1846_v51 = vpop.f32.mrf.mxu0 }
 0x233   :  { %v1182_v19 = vmax.f32 %v1142_v38, 0.0  ;;  %v1847_v17 = vadd.f32 %v1846_v51, %v1845_v41 }
 0x234   :  { %v1848_v48 = vpop.f32.mrf.mxu0 }
 0x235   :  { %v1199_v22 = vpack.c.bf16 %v1182_v19, %v1181_v54  ;;  %v1147_v61 = vadd.f32 %v1847_v17, %v2607_v33 }
 0x236   :  { %v1849_v21 = vpop.f32.mrf.mxu0 }
 0x237   :  { %v1850_v57 = vadd.f32 %v1849_v21, %v1848_v48  ;;  %1919 = vmatprep.mubr.bf16.mxu1 %v1199_v22  ;;  %v1183_v53 = vmax.f32 %v1147_v61, 0.0 }
 0x239   :  { %v1150_v59 = vadd.f32 %v1850_v57, %v2607_v33 }
 0x23b   :  { %v1184_v36 = vmax.f32 %v1150_v59, 0.0 }
 0x23d   :  { %v1200_v23 = vpack.c.bf16 %v1184_v36, %v1183_v53 }
 0x23f   :  { %1920 = vmatmul.mubr.bf16.gmra.mxu1 %v1200_v23 }
 0x28f   :  { %v1893_v58 = vpop.f32.mrf.mxu1 }
 0x290   :  { %v1315_v55 = vadd.f32 %v1893_v58, %v2644_v49 }
 0x291   :  { %v1306_v50 = vpop.f32.mrf.mxu1 }
 0x292   :  { %v1435_v0 = vmax.f32 %v1315_v55, 0.0  ;;  %v1307_v33 = vadd.f32 %v2644_v49, %v1306_v50 }
 0x293   :  { %v1894_v29 = vpop.f32.mrf.mxu1 }
 0x294   :  { %v1433_v25 = vmax.f32 %v1307_v33, 0.0  ;;  %v1318_v52 = vadd.f32 %v1894_v29, %v2644_v49  ;;  %v1474_v27 = vmul.f32 %v2650_v60, %v1435_v0 }
 0x295   :  { %v1309_v30 = vpop.f32.mrf.mxu1 }
 0x296   :  { %v1436_v7 = vmax.f32 %v1318_v52, 0.0  ;;  %v1310_v2 = vadd.f32 %v2644_v49, %v1309_v30  ;;  %v1511_v6 = vsel %vm1504_vm2, %v1474_v27, 0.0  ;;  %v1472_v32 = vmul.f32 %v2650_v60, %v1433_v25 }
 0x297   :  { %1512 = vadd.xlane.f32.xlu1 %v1511_v6 }
 0x298   :  { %v1434_v45 = vmax.f32 %v1310_v2, 0.0  ;;  %v1505_v62 = vsel %vm1504_vm2, %v1472_v32, 0.0  ;;  %v1475_v43 = vmul.f32 %v2650_v60, %v1436_v7 }
 0x299   :  { %1506 = vadd.xlane.f32.xlu0 %v1505_v62 }
 0x29a   :  { %v1514_v4 = vsel %vm1504_vm2, %v1475_v43, 0.0  ;;  %v1473_v8 = vmul.f32 %v2650_v60, %v1434_v45 }
 0x29b   :  { %1515 = vadd.xlane.f32.xlu1 %v1514_v4 }
 0x29c   :  { %v1508_v5 = vsel %vm1504_vm2, %v1473_v8, 0.0 }
 0x29d   :  { %1509 = vadd.xlane.f32.xlu0 %v1508_v5 }
 0x29f   :  { %v1897_v14 = vpop.f32.mrf.mxu1 }
 0x2a0   :  { %v1331_v63 = vadd.f32 %v1897_v14, %v2644_v49 }
 0x2a1   :  { %v1322_v56 = vpop.f32.mrf.mxu1 }
 0x2a2   :  { %v1439_v1 = vmax.f32 %v1331_v63, 0.0  ;;  %v1323_v9 = vadd.f32 %v2644_v49, %v1322_v56 }
 0x2a3   :  { %v1898_v26 = vpop.f32.mrf.mxu1 }
 0x2a4   :  { %v1437_v31 = vmax.f32 %v1323_v9, 0.0  ;;  %v1334_v34 = vadd.f32 %v1898_v26, %v2644_v49  ;;  %v1478_v16 = vmul.f32 %v2650_v60, %v1439_v1 }
 0x2a5   :  { %v1325_v12 = vpop.f32.mrf.mxu1 }
 0x2a6   :  { %v1440_v3 = vmax.f32 %v1334_v34, 0.0  ;;  %v1326_v44 = vadd.f32 %v2644_v49, %v1325_v12  ;;  %v1523_v11 = vsel %vm1504_vm2, %v1478_v16, 0.0  ;;  %v1476_v10 = vmul.f32 %v2650_v60, %v1437_v31 }
 0x2a7   :  { %1524 = vadd.xlane.f32.xlu0 %v1523_v11 }
 0x2a8   :  { %v1438_v20 = vmax.f32 %v1326_v44, 0.0  ;;  %v1479_v18 = vmul.f32 %v2650_v60, %v1440_v3  ;;  %v1517_v37 = vsel %vm1504_vm2, %v1476_v10, 0.0 }
 0x2aa   :  { %v1526_v13 = vsel %vm1504_vm2, %v1479_v18, 0.0  ;;  %v1477_v39 = vmul.f32 %v2650_v60, %v1438_v20 }
 0x2ab   :  { %1527 = vadd.xlane.f32.xlu1 %v1526_v13  ;;  %1518 = vadd.xlane.f32.xlu0 %v1517_v37 }
 0x2ac   :  { %v1520_v35 = vsel %vm1504_vm2, %v1477_v39, 0.0 }
 0x2af   :  { %v1901_v40 = vpop.f32.mrf.mxu1  ;;  %1521 = vadd.xlane.f32.xlu1 %v1520_v35 }
 0x2b0   :  { %v1347_v46 = vadd.f32 %v1901_v40, %v2644_v49 }
 0x2b1   :  { %v1338_v15 = vpop.f32.mrf.mxu1 }
 0x2b2   :  { %v1443_v24 = vmax.f32 %v1347_v46, 0.0  ;;  %v1339_v47 = vadd.f32 %v2644_v49, %v1338_v15 }
 0x2b3   :  { %v1902_v42 = vpop.f32.mrf.mxu1 }
 0x2b4   :  { %v1441_v41 = vmax.f32 %v1339_v47, 0.0  ;;  %v1350_v38 = vadd.f32 %v1902_v42, %v2644_v49  ;;  %v1482_v51 = vmul.f32 %v2650_v60, %v1443_v24 }
 0x2b5   :  { %v1341_v54 = vpop.f32.mrf.mxu1 }
 0x2b6   :  { %v1444_v19 = vmax.f32 %v1350_v38, 0.0  ;;  %v1342_v17 = vadd.f32 %v2644_v49, %v1341_v54  ;;  %v1535_v48 = vsel %vm1504_vm2, %v1482_v51, 0.0  ;;  %v1480_v22 = vmul.f32 %v2650_v60, %v1441_v41 }
 0x2b7   :  { %1536 = vadd.xlane.f32.xlu0 %v1535_v48 }
 0x2b8   :  { %v1442_v21 = vmax.f32 %v1342_v17, 0.0  ;;  %v1483_v61 = vmul.f32 %v2650_v60, %v1444_v19  ;;  %v1529_v59 = vsel %vm1504_vm2, %v1480_v22, 0.0 }
 0x2ba   :  { %v1538_v57 = vsel %vm1504_vm2, %v1483_v61, 0.0  ;;  %v1481_v53 = vmul.f32 %v2650_v60, %v1442_v21 }
 0x2bb   :  { %1539 = vadd.xlane.f32.xlu1 %v1538_v57  ;;  %1530 = vadd.xlane.f32.xlu0 %v1529_v59 }
 0x2bc   :  { %v1532_v36 = vsel %vm1504_vm2, %v1481_v53, 0.0 }
 0x2bf   :  { %v1905_v23 = vpop.f32.mrf.mxu1  ;;  %1533 = vadd.xlane.f32.xlu1 %v1532_v36 }
 0x2c0   :  { %v1363_v58 = vadd.f32 %v1905_v23, %v2644_v49 }
 0x2c1   :  { %v1354_v55 = vpop.f32.mrf.mxu1 }
 0x2c2   :  { %v1447_v50 = vmax.f32 %v1363_v58, 0.0  ;;  %v1355_v0 = vadd.f32 %v2644_v49, %v1354_v55 }
 0x2c3   :  { %v1906_v33 = vpop.f32.mrf.mxu1 }
 0x2c4   :  { %v1445_v28 = vmax.f32 %v1355_v0, 0.0  ;;  %v1366_v29 = vadd.f32 %v1906_v33, %v2644_v49  ;;  %v1486_v25 = vmul.f32 %v2650_v60, %v1447_v50 }
 0x2c5   :  { %v1357_v52 = vpop.f32.mrf.mxu1 }
 0x2c6   :  { %v1448_v27 = vmax.f32 %v1366_v29, 0.0  ;;  %v1358_v30 = vadd.f32 %v2644_v49, %v1357_v52  ;;  %v1547_v7 = vsel %vm1504_vm2, %v1486_v25, 0.0  ;;  %v1484_v2 = vmul.f32 %v2650_v60, %v1445_v28 }
 0x2c7   :  { %1548 = vadd.xlane.f32.xlu0 %v1547_v7 }
 0x2c8   :  { %v1446_v6 = vmax.f32 %v1358_v30, 0.0  ;;  %v1487_v32 = vmul.f32 %v2650_v60, %v1448_v27  ;;  %v1541_v62 = vsel %vm1504_vm2, %v1484_v2, 0.0 }
 0x2ca   :  { %v1550_v45 = vsel %vm1504_vm2, %v1487_v32, 0.0  ;;  %v1485_v43 = vmul.f32 %v2650_v60, %v1446_v6 }
 0x2cb   :  { %1551 = vadd.xlane.f32.xlu1 %v1550_v45  ;;  %1542 = vadd.xlane.f32.xlu0 %v1541_v62 }
 0x2cc   :  { %v1544_v4 = vsel %vm1504_vm2, %v1485_v43, 0.0 }
 0x2cf   :  { %v1909_v8 = vpop.f32.mrf.mxu1  ;;  %1545 = vadd.xlane.f32.xlu1 %v1544_v4 }
 0x2d0   :  { %v1379_v5 = vadd.f32 %v1909_v8, %v2644_v49 }
 0x2d1   :  { %v1370_v14 = vpop.f32.mrf.mxu1 }
 0x2d2   :  { %v1451_v63 = vmax.f32 %v1379_v5, 0.0  ;;  %v1371_v56 = vadd.f32 %v2644_v49, %v1370_v14 }
 0x2d3   :  { %v1910_v1 = vpop.f32.mrf.mxu1 }
 0x2d4   :  { %v1449_v9 = vmax.f32 %v1371_v56, 0.0  ;;  %v1382_v26 = vadd.f32 %v1910_v1, %v2644_v49  ;;  %v1490_v31 = vmul.f32 %v2650_v60, %v1451_v63 }
 0x2d5   :  { %v1373_v34 = vpop.f32.mrf.mxu1 }
 0x2d6   :  { %v1452_v16 = vmax.f32 %v1382_v26, 0.0  ;;  %v1374_v12 = vadd.f32 %v2644_v49, %v1373_v34  ;;  %v1559_v3 = vsel %vm1504_vm2, %v1490_v31, 0.0  ;;  %v1488_v44 = vmul.f32 %v2650_v60, %v1449_v9 }
 0x2d7   :  { %1560 = vadd.xlane.f32.xlu0 %v1559_v3 }
 0x2d8   :  { %v1450_v11 = vmax.f32 %v1374_v12, 0.0  ;;  %v1491_v10 = vmul.f32 %v2650_v60, %v1452_v16  ;;  %v1553_v18 = vsel %vm1504_vm2, %v1488_v44, 0.0 }
 0x2da   :  { %v1562_v20 = vsel %vm1504_vm2, %v1491_v10, 0.0  ;;  %v1489_v13 = vmul.f32 %v2650_v60, %v1450_v11 }
 0x2db   :  { %1563 = vadd.xlane.f32.xlu1 %v1562_v20  ;;  %1554 = vadd.xlane.f32.xlu0 %v1553_v18  ;;  %v2750_v18 = vld [vmem:[#allocation2] ss:$0 sm:$0xff] }
 0x2dc   :  { %v1556_v37 = vsel %vm1504_vm2, %v1489_v13, 0.0 }
 0x2df   :  { %v1913_v39 = vpop.f32.mrf.mxu1  ;;  %1557 = vadd.xlane.f32.xlu1 %v1556_v37 }
 0x2e0   :  { %v1395_v35 = vadd.f32 %v1913_v39, %v2644_v49 }
 0x2e1   :  { %v1386_v40 = vpop.f32.mrf.mxu1 }
 0x2e2   :  { %v1455_v46 = vmax.f32 %v1395_v35, 0.0  ;;  %v1387_v15 = vadd.f32 %v2644_v49, %v1386_v40 }
 0x2e3   :  { %v1914_v24 = vpop.f32.mrf.mxu1 }
 0x2e4   :  { %v1453_v47 = vmax.f32 %v1387_v15, 0.0  ;;  %v1398_v42 = vadd.f32 %v1914_v24, %v2644_v49  ;;  %v1494_v41 = vmul.f32 %v2650_v60, %v1455_v46 }
 0x2e5   :  { %v1389_v38 = vpop.f32.mrf.mxu1 }
 0x2e6   :  { %v1456_v51 = vmax.f32 %v1398_v42, 0.0  ;;  %v1390_v54 = vadd.f32 %v2644_v49, %v1389_v38  ;;  %v1571_v19 = vsel %vm1504_vm2, %v1494_v41, 0.0  ;;  %v1492_v17 = vmul.f32 %v2650_v60, %v1453_v47 }
 0x2e7   :  { %1572 = vadd.xlane.f32.xlu0 %v1571_v19 }
 0x2e8   :  { %v1454_v48 = vmax.f32 %v1390_v54, 0.0  ;;  %v1495_v22 = vmul.f32 %v2650_v60, %v1456_v51  ;;  %v1565_v61 = vsel %vm1504_vm2, %v1492_v17, 0.0 }
 0x2ea   :  { %v1574_v21 = vsel %vm1504_vm2, %v1495_v22, 0.0  ;;  %v1493_v57 = vmul.f32 %v2650_v60, %v1454_v48 }
 0x2eb   :  { %1575 = vadd.xlane.f32.xlu1 %v1574_v21  ;;  %1566 = vadd.xlane.f32.xlu0 %v1565_v61 }
 0x2ec   :  { %v1568_v59 = vsel %vm1504_vm2, %v1493_v57, 0.0 }
 0x2ef   :  { %v1917_v53 = vpop.f32.mrf.mxu1  ;;  %1569 = vadd.xlane.f32.xlu1 %v1568_v59 }
 0x2f0   :  { %v1411_v36 = vadd.f32 %v1917_v53, %v2644_v49 }
 0x2f1   :  { %v1402_v23 = vpop.f32.mrf.mxu1 }
 0x2f2   :  { %v1459_v58 = vmax.f32 %v1411_v36, 0.0  ;;  %v1403_v55 = vadd.f32 %v2644_v49, %v1402_v23 }
 0x2f3   :  { %v1918_v50 = vpop.f32.mrf.mxu1 }
 0x2f4   :  { %v1457_v0 = vmax.f32 %v1403_v55, 0.0  ;;  %v1414_v33 = vadd.f32 %v1918_v50, %v2644_v49  ;;  %v1498_v28 = vmul.f32 %v2650_v60, %v1459_v58 }
 0x2f5   :  { %v1405_v29 = vpop.f32.mrf.mxu1 }
 0x2f6   :  { %v1460_v25 = vmax.f32 %v1414_v33, 0.0  ;;  %v1406_v52 = vadd.f32 %v2644_v49, %v1405_v29  ;;  %v1583_v27 = vsel %vm1504_vm2, %v1498_v28, 0.0  ;;  %v1496_v30 = vmul.f32 %v2650_v60, %v1457_v0 }
 0x2f7   :  { %1584 = vadd.xlane.f32.xlu0 %v1583_v27 }
 0x2f8   :  { %v1458_v7 = vmax.f32 %v1406_v52, 0.0  ;;  %v1499_v2 = vmul.f32 %v2650_v60, %v1460_v25  ;;  %v1577_v32 = vsel %vm1504_vm2, %v1496_v30, 0.0 }
 0x2fa   :  { %v1586_v6 = vsel %vm1504_vm2, %v1499_v2, 0.0  ;;  %v1497_v45 = vmul.f32 %v2650_v60, %v1458_v7 }
 0x2fb   :  { %1587 = vadd.xlane.f32.xlu1 %v1586_v6  ;;  %1578 = vadd.xlane.f32.xlu0 %v1577_v32 }
 0x2fc   :  { %v1580_v62 = vsel %vm1504_vm2, %v1497_v45, 0.0 }
 0x2ff   :  { %v1921_v43 = vpop.f32.mrf.mxu1  ;;  %1581 = vadd.xlane.f32.xlu1 %v1580_v62 }
 0x300   :  { %v1427_v4 = vadd.f32 %v1921_v43, %v2644_v49 }
 0x301   :  { %v1418_v8 = vpop.f32.mrf.mxu1 }
 0x302   :  { %v1419_v5 = vadd.f32 %v2644_v49, %v1418_v8  ;;  %v1463_v63 = vmax.f32 %v1427_v4, 0.0 }
 0x303   :  { %v1922_v14 = vpop.f32.mrf.mxu1 }
 0x304   :  { %v1461_v56 = vmax.f32 %v1419_v5, 0.0  ;;  %v1430_v1 = vadd.f32 %v1922_v14, %v2644_v49  ;;  %v1502_v3 = vmul.f32 %v2650_v60, %v1463_v63 }
 0x305   :  { %v1421_v9 = vpop.f32.mrf.mxu1 }
 0x306   :  { %v1422_v26 = vadd.f32 %v2644_v49, %v1421_v9  ;;  %v1500_v31 = vmul.f32 %v2650_v60, %v1461_v56  ;;  %v1464_v34 = vmax.f32 %v1430_v1, 0.0  ;;  %v1595_v10 = vsel %vm1504_vm2, %v1502_v3, 0.0 }
 0x308   :  { %v1462_v16 = vmax.f32 %v1422_v26, 0.0  ;;  %v1589_v12 = vsel %vm1504_vm2, %v1500_v31, 0.0  ;;  %v1503_v20 = vmul.f32 %v2650_v60, %v1464_v34 }
 0x309   :  { %1590 = vadd.xlane.f32.xlu0 %v1589_v12 }
 0x30a   :  { %v1501_v44 = vmul.f32 %v2650_v60, %v1462_v16  ;;  %v1598_v49 = vsel %vm1504_vm2, %v1503_v20, 0.0 }
 0x30c   :  { %v1592_v11 = vsel %vm1504_vm2, %v1501_v44, 0.0 }
 0x30d   :  { %1593 = vadd.xlane.f32.xlu1 %v1592_v11  ;;  %1596 = vadd.xlane.f32.xlu0 %v1595_v10 }
 0x311   :  { %1599 = vadd.xlane.f32.xlu1 %v1598_v49 }
 0x320   :  { %v1513_v13 = vpop.xlane.xlu1 %1512 }
 0x321   :  { %v1610_v37 = vadd.f32 %v2750_v18, %v1513_v13 }
 0x322   :  { %v1507_v39 = vpop.xlane.xlu0 %1506 }
 0x323   :  { %1643 = vst.msk [vmem:[%s2923_s11 + $0x10] sm:$0xff] %vm1640_vm3, %v1610_v37  ;;  %v1608_v35 = vadd.f32 %v2750_v18, %v1507_v39 }
 0x324   :  { %v1516_v60 = vpop.xlane.xlu1 %1515 }
 0x325   :  { %1641 = vst.msk [vmem:[%s2923_s11] sm:$0xff] %vm1640_vm3, %v1608_v35  ;;  %v1611_v40 = vadd.f32 %v2750_v18, %v1516_v60 }
 0x326   :  { %v1510_v46 = vpop.xlane.xlu0 %1509 }
 0x327   :  { %1644 = vst.msk [vmem:[%s2923_s11 + $0x18] sm:$0xff] %vm1640_vm3, %v1611_v40  ;;  %v1609_v15 = vadd.f32 %v2750_v18, %v1510_v46 }
 0x329   :  { %1642 = vst.msk [vmem:[%s2923_s11 + $0x8] sm:$0xff] %vm1640_vm3, %v1609_v15 }
 0x330   :  { %v1525_v24 = vpop.xlane.xlu0 %1524 }
 0x331   :  { %v1614_v47 = vadd.f32 %v2750_v18, %v1525_v24 }
 0x333   :  { %1647 = vst.msk [vmem:[%s2923_s11 + $0x30] sm:$0xff] %vm1640_vm3, %v1614_v47 }
 0x334   :  { %v1528_v42 = vpop.xlane.xlu1 %1527  ;;  %v1519_v41 = vpop.xlane.xlu0 %1518 }
 0x335   :  { %v1615_v38 = vadd.f32 %v2750_v18, %v1528_v42  ;;  %v1612_v51 = vadd.f32 %v2750_v18, %v1519_v41 }
 0x337   :  { %1648 = vst.msk [vmem:[%s2923_s11 + $0x38] sm:$0xff] %vm1640_vm3, %v1615_v38  ;;  %1645 = vst.msk [vmem:[%s2923_s11 + $0x20] sm:$0xff] %vm1640_vm3, %v1612_v51 }
 0x338   :  { %v1522_v54 = vpop.xlane.xlu1 %1521 }
 0x339   :  { %v1613_v19 = vadd.f32 %v2750_v18, %v1522_v54 }
 0x33b   :  { %1646 = vst.msk [vmem:[%s2923_s11 + $0x28] sm:$0xff] %vm1640_vm3, %v1613_v19 }
 0x340   :  { %v1537_v17 = vpop.xlane.xlu0 %1536 }
 0x341   :  { %v1618_v48 = vadd.f32 %v2750_v18, %v1537_v17 }
 0x343   :  { %1651 = vst.msk [vmem:[%s2923_s11 + $0x50] sm:$0xff] %vm1640_vm3, %v1618_v48 }
 0x344   :  { %v1540_v22 = vpop.xlane.xlu1 %1539  ;;  %v1531_v21 = vpop.xlane.xlu0 %1530 }
 0x345   :  { %v1619_v61 = vadd.f32 %v2750_v18, %v1540_v22  ;;  %v1616_v57 = vadd.f32 %v2750_v18, %v1531_v21 }
 0x347   :  { %1652 = vst.msk [vmem:[%s2923_s11 + $0x58] sm:$0xff] %vm1640_vm3, %v1619_v61  ;;  %1649 = vst.msk [vmem:[%s2923_s11 + $0x40] sm:$0xff] %vm1640_vm3, %v1616_v57 }
 0x348   :  { %v1534_v59 = vpop.xlane.xlu1 %1533 }
 0x349   :  { %v1617_v53 = vadd.f32 %v2750_v18, %v1534_v59 }
 0x34b   :  { %1650 = vst.msk [vmem:[%s2923_s11 + $0x48] sm:$0xff] %vm1640_vm3, %v1617_v53 }
 0x350   :  { %v1549_v36 = vpop.xlane.xlu0 %1548 }
 0x351   :  { %v1622_v23 = vadd.f32 %v2750_v18, %v1549_v36 }
 0x353   :  { %1655 = vst.msk [vmem:[%s2923_s11 + $0x70] sm:$0xff] %vm1640_vm3, %v1622_v23 }
 0x354   :  { %v1552_v58 = vpop.xlane.xlu1 %1551  ;;  %v1543_v55 = vpop.xlane.xlu0 %1542 }
 0x355   :  { %v1623_v50 = vadd.f32 %v2750_v18, %v1552_v58  ;;  %v1620_v0 = vadd.f32 %v2750_v18, %v1543_v55 }
 0x357   :  { %1656 = vst.msk [vmem:[%s2923_s11 + $0x78] sm:$0xff] %vm1640_vm3, %v1623_v50  ;;  %1653 = vst.msk [vmem:[%s2923_s11 + $0x60] sm:$0xff] %vm1640_vm3, %v1620_v0 }
 0x358   :  { %v1546_v33 = vpop.xlane.xlu1 %1545 }
 0x359   :  { %v1621_v28 = vadd.f32 %v2750_v18, %v1546_v33 }
 0x35b   :  { %1654 = vst.msk [vmem:[%s2923_s11 + $0x68] sm:$0xff] %vm1640_vm3, %v1621_v28 }
 0x360   :  { %v1561_v29 = vpop.xlane.xlu0 %1560 }
 0x361   :  { %v1626_v25 = vadd.f32 %v2750_v18, %v1561_v29 }
 0x363   :  { %1659 = vst.msk [vmem:[%s2923_s11 + $0x90] sm:$0xff] %vm1640_vm3, %v1626_v25 }
 0x364   :  { %v1564_v52 = vpop.xlane.xlu1 %1563  ;;  %v1555_v27 = vpop.xlane.xlu0 %1554 }
 0x365   :  { %v1627_v30 = vadd.f32 %v2750_v18, %v1564_v52  ;;  %v1624_v7 = vadd.f32 %v2750_v18, %v1555_v27 }
 0x367   :  { %1660 = vst.msk [vmem:[%s2923_s11 + $0x98] sm:$0xff] %vm1640_vm3, %v1627_v30  ;;  %1657 = vst.msk [vmem:[%s2923_s11 + $0x80] sm:$0xff] %vm1640_vm3, %v1624_v7 }
 0x368   :  { %v1558_v2 = vpop.xlane.xlu1 %1557 }
 0x369   :  { %v1625_v6 = vadd.f32 %v2750_v18, %v1558_v2 }
 0x36b   :  { %1658 = vst.msk [vmem:[%s2923_s11 + $0x88] sm:$0xff] %vm1640_vm3, %v1625_v6 }
 0x370   :  { %v1573_v32 = vpop.xlane.xlu0 %1572 }
 0x371   :  { %v1630_v45 = vadd.f32 %v2750_v18, %v1573_v32 }
 0x373   :  { %1663 = vst.msk [vmem:[%s2923_s11 + $0xb0] sm:$0xff] %vm1640_vm3, %v1630_v45 }
 0x374   :  { %v1576_v62 = vpop.xlane.xlu1 %1575  ;;  %v1567_v43 = vpop.xlane.xlu0 %1566 }
 0x375   :  { %v1631_v4 = vadd.f32 %v2750_v18, %v1576_v62  ;;  %v1628_v8 = vadd.f32 %v2750_v18, %v1567_v43 }
 0x377   :  { %1664 = vst.msk [vmem:[%s2923_s11 + $0xb8] sm:$0xff] %vm1640_vm3, %v1631_v4  ;;  %1661 = vst.msk [vmem:[%s2923_s11 + $0xa0] sm:$0xff] %vm1640_vm3, %v1628_v8 }
 0x378   :  { %v1570_v5 = vpop.xlane.xlu1 %1569 }
 0x379   :  { %v1629_v14 = vadd.f32 %v2750_v18, %v1570_v5 }
 0x37b   :  { %1662 = vst.msk [vmem:[%s2923_s11 + $0xa8] sm:$0xff] %vm1640_vm3, %v1629_v14 }
 0x380   :  { %v1585_v63 = vpop.xlane.xlu0 %1584 }
 0x381   :  { %v1634_v56 = vadd.f32 %v2750_v18, %v1585_v63 }
 0x383   :  { %1667 = vst.msk [vmem:[%s2923_s11 + $0xd0] sm:$0xff] %vm1640_vm3, %v1634_v56 }
 0x384   :  { %v1588_v1 = vpop.xlane.xlu1 %1587  ;;  %v1579_v9 = vpop.xlane.xlu0 %1578 }
 0x385   :  { %v1635_v26 = vadd.f32 %v2750_v18, %v1588_v1  ;;  %v1632_v31 = vadd.f32 %v2750_v18, %v1579_v9 }
 0x387   :  { %1668 = vst.msk [vmem:[%s2923_s11 + $0xd8] sm:$0xff] %vm1640_vm3, %v1635_v26  ;;  %1665 = vst.msk [vmem:[%s2923_s11 + $0xc0] sm:$0xff] %vm1640_vm3, %v1632_v31 }
 0x388   :  { %v1582_v34 = vpop.xlane.xlu1 %1581 }
 0x389   :  { %v1633_v16 = vadd.f32 %v2750_v18, %v1582_v34 }
 0x38b   :  { %1666 = vst.msk [vmem:[%s2923_s11 + $0xc8] sm:$0xff] %vm1640_vm3, %v1633_v16 }
 0x392   :  { %v1591_v12 = vpop.xlane.xlu0 %1590 }
 0x393   :  { %v1636_v3 = vadd.f32 %v2750_v18, %v1591_v12 }
 0x395   :  { %1669 = vst.msk [vmem:[%s2923_s11 + $0xe0] sm:$0xff] %vm1640_vm3, %v1636_v3 }
 0x396   :  { %v1594_v44 = vpop.xlane.xlu1 %1593  ;;  %v1597_v11 = vpop.xlane.xlu0 %1596 }
 0x397   :  { %v1637_v10 = vadd.f32 %v2750_v18, %v1594_v44  ;;  %v1638_v20 = vadd.f32 %v2750_v18, %v1597_v11 }
 0x399   :  { %1670 = vst.msk [vmem:[%s2923_s11 + $0xe8] sm:$0xff] %vm1640_vm3, %v1637_v10  ;;  %1671 = vst.msk [vmem:[%s2923_s11 + $0xf0] sm:$0xff] %vm1640_vm3, %v1638_v20 }
 0x39a   :  { %v1600_v49 = vpop.xlane.xlu1 %1599 }
 0x39b   :  { %v1639_v13 = vadd.f32 %v2750_v18, %v1600_v49 }
 0x39d   :  { %1672 = vst.msk [vmem:[%s2923_s11 + $0xf8] sm:$0xff] %vm1640_vm3, %v1639_v13 }

</bundles_post_ra>
